<compile_context>
chip_gen: v6e
topology: v6e:2x2x1
jax: 0.10.0
libtpu: 0.0.40
codegen_flags: <defaults>
</compile_context>

<pallas_src>
import functools

import jax
import jax.numpy as jnp
from jax import lax
from jax.experimental import pallas as pl
from jax.experimental.pallas import tpu as pltpu


# ----------------------------------------------------------------------------
# Fused kernel: BiLSTM (PyTorch gate order i, f, g, o) + multi-hop attention
# ----------------------------------------------------------------------------
def lstm_multi_att_kernel(lens_ref, x_ref, wih_ref, whh_f_ref, whh_b_ref,
                          bias_ref, w1_ref, w2_ref,
                          out_ref, score_ref,
                          gin_ref, hcat_ref,
                          *, hidden, seq_len, batch):
    H, T, B = hidden, seq_len, batch
    f32 = jnp.float32
    bf16 = jnp.bfloat16

    lens = lens_ref[...]                                     # (B, 1) int32

    # ---- Phase 1: hoisted input projection (both directions, one MXU call) --
    # rows flattened time-major: row = t*B + b ; cols: [fwd 4H | bwd 4H]
    gin = (jnp.dot(x_ref[...], wih_ref[...], preferred_element_type=f32)
           + bias_ref[...])                                  # (T*B, 8H) f32
    # Stage into a (T, B, 8H) scratch so the in-loop reads are aligned ref
    # slices; the unaligned sublane extraction happens here, off the chain.
    for t in range(T):
        gin_ref[t] = gin[t * B:(t + 1) * B, :]

    whh_f = whh_f_ref[...]                                   # (H, 4H) bf16
    whh_b = whh_b_ref[...]                                   # (H, 4H) bf16

    def gates_to_hc(g, c_prev):
        # Two full-(B, 4H) EUP passes instead of four quarter-width ones.
        sg = jax.nn.sigmoid(g)
        tg = jnp.tanh(g)
        # TODO(synk): the remaining 32-lane slices disappear at production
        # sizes by padding each gate to a full 128-lane tile.
        i = sg[:, 0:H]
        f = sg[:, H:2 * H]
        o = sg[:, 3 * H:4 * H]
        gg = tg[:, 2 * H:3 * H]
        c_new = f * c_prev + i * gg
        return o * jnp.tanh(c_new), c_new

    # ---- Phase 2: fused fwd+bwd recurrence, fully unrolled (T static) -------
    zeros = jnp.zeros((B, H), f32)
    h_f, c_f, h_b, c_b = zeros, zeros, zeros, zeros
    for t in range(T):
        tb = T - 1 - t
        g_f = (gin_ref[t, :, 0:4 * H]
               + jnp.dot(h_f.astype(bf16), whh_f, preferred_element_type=f32))
        g_b = (gin_ref[tb, :, 4 * H:8 * H]
               + jnp.dot(h_b.astype(bf16), whh_b, preferred_element_type=f32))
        h_f_new, c_f_new = gates_to_hc(g_f, c_f)
        h_b_new, c_b_new = gates_to_hc(g_b, c_b)

        m_f = lens > t                                       # (B, 1) bool
        m_b = lens > tb
        # One contiguous (B, H) store per direction per step; row = t*B + b.
        hcat_ref[t * B:(t + 1) * B, 0:H] = jnp.where(m_f, h_f_new, 0.0)
        hcat_ref[tb * B:(tb + 1) * B, H:2 * H] = jnp.where(m_b, h_b_new, 0.0)

        h_f = jnp.where(m_f, h_f_new, h_f)
        c_f = jnp.where(m_f, c_f_new, c_f)
        h_b = jnp.where(m_b, h_b_new, h_b)
        c_b = jnp.where(m_b, c_b_new, c_b)

    # ---- Phase 3: multi-hop attention on the VMEM-resident BiLSTM output ----
    h_flat = hcat_ref[...]                                   # (T*B, 2H) f32
    # Batched projections: two MXU calls over ALL (t, b) rows at once.
    u = jnp.tanh(jnp.dot(h_flat.astype(bf16), w1_ref[...],
                         preferred_element_type=f32))        # (T*B, A) f32
    s = jnp.dot(u.astype(bf16), w2_ref[...],
                preferred_element_type=f32)                  # (T*B, R) f32

    # Per-row (t, b) index math; B is a power of two here, so shift/and avoid
    # vector integer div/rem.  TODO(synk): use lax.div/lax.rem for general B.
    row = lax.broadcasted_iota(jnp.int32, (T * B, 1), 0)
    shift = (B - 1).bit_length()
    step_rows = jnp.right_shift(row, shift)                  # t of each row
    bid_rows = jnp.bitwise_and(row, B - 1)                   # b of each row
    lens_rows = jnp.where(bid_rows == 0, lens[0:1, :], 0)
    for b in range(1, B):
        lens_rows = jnp.where(bid_rows == b, lens[b:b + 1, :], lens_rows)
    valid = step_rows < lens_rows                            # (T*B, 1) bool

    s = jnp.where(valid, s, -1e30)                           # mask padded steps
    s = s - jnp.max(s, axis=0, keepdims=True)                # column shift (safe)
    e = jnp.where(valid, jnp.exp(s), 0.0)                    # (T*B, R) f32

    a_all = jnp.zeros_like(e)
    for b in range(B):
        eb = jnp.where(bid_rows == b, e, 0.0)                # rows of batch b
        denom = jnp.sum(eb, axis=0, keepdims=True)           # (1, R)
        a_b = eb * pl.reciprocal(denom, approx=True)         # softmax over seq
        # (R, 2H) = a_b^T @ h: contract axis 0 of both, no explicit transpose.
        out_ref[b] = lax.dot_general(a_b, h_flat, (((0,), (0,)), ((), ())),
                                     preferred_element_type=f32)
        a_all = a_all + a_b
    score_ref[...] = a_all                                   # (T*B, R), row = t*B + b


def run_lstm_multi_att(x_flat, lens_b1, wih_all, whh_f, whh_b, b_all, w1, w2,
                       hidden, seq_len, batch):
    T, B, H = seq_len, batch, hidden
    E = x_flat.shape[1]
    A = w1.shape[1]
    R = w2.shape[1]
    kernel = functools.partial(lstm_multi_att_kernel,
                               hidden=H, seq_len=T, batch=B)

    def vfull(shape):
        return pl.BlockSpec(shape, lambda i, s=shape: (0,) * len(s))

    out, scores_flat = pl.pallas_call(
        kernel,
        grid=(1,),
        in_specs=[
            vfull((B, 1)),                                   # lengths (int32)
            vfull((T * B, E)),                               # flattened inputs (bf16)
            vfull((E, 8 * H)),                               # W_ih fwd|bwd (bf16)
            vfull((H, 4 * H)),                               # W_hh fwd (bf16)
            vfull((H, 4 * H)),                               # W_hh bwd (bf16)
            vfull((1, 8 * H)),                               # bias fwd|bwd (f32)
            vfull((2 * H, A)),                               # W1 (bf16)
            vfull((A, R)),                                   # W2 (bf16)
        ],
        out_specs=[vfull((B, R, 2 * H)), vfull((T * B, R))],
        out_shape=[jax.ShapeDtypeStruct((B, R, 2 * H), jnp.float32),
                   jax.ShapeDtypeStruct((T * B, R), jnp.float32)],
        scratch_shapes=[pltpu.VMEM((T, B, 8 * H), jnp.float32),   # staged gin
                        pltpu.VMEM((T * B, 2 * H), jnp.float32)], # BiLSTM output
        compiler_params=pltpu.CompilerParams(
            dimension_semantics=("arbitrary",)),
    )(lens_b1, x_flat, wih_all, whh_f, whh_b, b_all, w1, w2)
    return out, scores_flat


# ----------------------------------------------------------------------------
# LstmMultiAtt forward (thin JAX wrapper)
# ----------------------------------------------------------------------------
def lstm_multi_att_forward(params, sequence_input, seq_lengths, hidden,
                           drop_out=0.0):
    B, T, E = sequence_input.shape
    R = params["w2"].shape[1]
    bf16 = jnp.bfloat16
    # flatten time-major (row = t*B + b) for the hoisted input projection
    x_flat = (jnp.transpose(sequence_input, (1, 0, 2))
              .reshape(T * B, E).astype(bf16))
    lens_b1 = seq_lengths.astype(jnp.int32).reshape(B, 1)
    wih_all = jnp.concatenate([params["wih_f"], params["wih_b"]],
                              axis=1).astype(bf16)
    b_all = jnp.concatenate([params["b_f"], params["b_b"]],
                            axis=1).astype(jnp.float32)

    att_output, scores_flat = run_lstm_multi_att(
        x_flat, lens_b1, wih_all,
        params["whh_f"].astype(bf16), params["whh_b"].astype(bf16), b_all,
        params["w1"].astype(bf16), params["w2"].astype(bf16),
        hidden=hidden, seq_len=T, batch=B)

    # (T*B, R) time-major rows -> (B, hops, T) API layout (free in XLA).
    attention_scores = jnp.transpose(scores_flat.reshape(T, B, R), (1, 2, 0))
    # drop_out > 0: nn.Dropout is identity at inference time -> no-op here.
    return att_output, attention_scores


# ----------------------------------------------------------------------------
# Deterministic parameter init (shapes implied by the module __init__)
# ----------------------------------------------------------------------------
def init_params(key, input_size, hidden, attention_size, attention_hops):
    ks = jax.random.split(key, 10)
    bl = 1.0 / jnp.sqrt(jnp.float32(hidden))
    ba = 1.0 / jnp.sqrt(jnp.float32(2 * hidden))

    def u(k, shape, b):
        return jax.random.uniform(k, shape, jnp.float32, -b, b)

    return dict(
        wih_f=u(ks[0], (input_size, 4 * hidden), bl),
        whh_f=u(ks[1], (hidden, 4 * hidden), bl),
        b_f=u(ks[2], (1, 4 * hidden), bl) + u(ks[3], (1, 4 * hidden), bl),  # b_ih + b_hh
        wih_b=u(ks[4], (input_size, 4 * hidden), bl),
        whh_b=u(ks[5], (hidden, 4 * hidden), bl),
        b_b=u(ks[6], (1, 4 * hidden), bl) + u(ks[7], (1, 4 * hidden), bl),
        w1=u(ks[8], (2 * hidden, attention_size), ba),        # Linear(2H, A, bias=False)
        w2=u(ks[9], (attention_size, attention_hops),
             1.0 / jnp.sqrt(jnp.float32(attention_size))),    # Linear(A, hops, bias=False)
    )


# ----------------------------------------------------------------------------
# Pure-JAX reference for verification
# ----------------------------------------------------------------------------
def ref_bilstm(x, lens, p, H):
    B, T, E = x.shape

    def run(reverse, wih, whh, b):
        h = jnp.zeros((B, H), jnp.float32)
        c = jnp.zeros((B, H), jnp.float32)
        outs = [None] * T
        order = range(T - 1, -1, -1) if reverse else range(T)
        for t in order:
            xt = x[:, t, :]
            g = xt @ wih + h @ whh + b
            i_ = jax.nn.sigmoid(g[:, :H]); f_ = jax.nn.sigmoid(g[:, H:2 * H])
            gg = jnp.tanh(g[:, 2 * H:3 * H]); o_ = jax.nn.sigmoid(g[:, 3 * H:])
            c_new = f_ * c + i_ * gg
            h_new = o_ * jnp.tanh(c_new)
            m = (t < lens)[:, None]
            h = jnp.where(m, h_new, h); c = jnp.where(m, c_new, c)
            outs[t] = jnp.where(m, h_new, 0.0)
        return jnp.stack(outs, axis=1)

    return jnp.concatenate([run(False, p["wih_f"], p["whh_f"], p["b_f"]),
                            run(True, p["wih_b"], p["whh_b"], p["b_b"])], axis=-1)


def ref_attention(h, lens, w1, w2):
    u = jnp.tanh(h @ w1)
    s = u @ w2                                               # (B, T, R)
    mask = jnp.arange(h.shape[1])[None, :, None] < lens[:, None, None]
    s = jnp.where(mask, s, -1e30)
    a = jax.nn.softmax(s, axis=1)                            # (B, T, R)
    out = jnp.einsum("btr,btd->brd", a, h)
    return out, jnp.transpose(a, (0, 2, 1))


# ----------------------------------------------------------------------------
if __name__ == "__main__":
    # Module hyper-parameters (small):
    #   input_size=16, lstm_hidden_size=32, lstm_num_layers=1,
    #   attention_size=64, attention_hops=4, drop_out=0.0
    B, T, E = 2, 8, 16
    H, A, R = 32, 64, 4

    key = jax.random.PRNGKey(0)
    kx, kp = jax.random.split(key)
    sequence_input = jax.random.normal(kx, (B, T, E), jnp.float32)
    seq_lengths = jnp.array([8, 5], jnp.int32)
    params = init_params(kp, E, H, A, R)

    fwd = jax.jit(functools.partial(lstm_multi_att_forward, hidden=H))
    att_out, att_scores = fwd(params, sequence_input, seq_lengths)
    att_out = jax.block_until_ready(att_out)
    att_scores = jax.block_until_ready(att_scores)

    # Verify against pure-JAX f32 reference (tolerance covers bf16 MXU inputs).
    lstm_ref = ref_bilstm(sequence_input, seq_lengths, params, H)
    out_ref, sc_ref = ref_attention(lstm_ref, seq_lengths, params["w1"], params["w2"])

    ok_out = bool(jnp.allclose(att_out, out_ref, atol=4e-2, rtol=4e-2))
    ok_sc = bool(jnp.allclose(att_scores, sc_ref, atol=4e-2, rtol=4e-2))
    ok_nan = not bool(jnp.isnan(att_out).any() or jnp.isnan(att_scores).any())
    if not (ok_out and ok_sc and ok_nan):
        raise ValueError("Pallas output mismatch vs reference "
                         f"(out_ok={ok_out}, scores_ok={ok_sc}, no_nan={ok_nan})")
    print("KERNEL_OK")
</pallas_src>

<mosaic_0001>
module attributes {stable_mosaic.version = 11 : i64} {
  func.func @lstm_multi_att_kernel(%arg0: i32, %arg1: memref<2x1xi32, #tpu.memory_space<vmem>>, %arg2: memref<16x16xbf16, #tpu.memory_space<vmem>>, %arg3: memref<16x256xbf16, #tpu.memory_space<vmem>>, %arg4: memref<32x128xbf16, #tpu.memory_space<vmem>>, %arg5: memref<32x128xbf16, #tpu.memory_space<vmem>>, %arg6: memref<1x256xf32, #tpu.memory_space<vmem>>, %arg7: memref<64x64xbf16, #tpu.memory_space<vmem>>, %arg8: memref<64x4xbf16, #tpu.memory_space<vmem>>, %arg9: memref<2x4x64xf32, #tpu.memory_space<vmem>>, %arg10: memref<16x4xf32, #tpu.memory_space<vmem>>, %arg11: memref<8x2x256xf32, #tpu.memory_space<vmem>>, %arg12: memref<16x64xf32, #tpu.memory_space<vmem>>) attributes {dimension_semantics = [#tpu.dimension_semantics<arbitrary>], iteration_bounds = array<i64: 1>, scalar_prefetch = 0 : i64, scratch_operands = 2 : i64, tpu.core_type = #tpu.core_type<tc>, window_params = [{pipeline_mode = #tpu.pipeline_mode<synchronous>, transform_indices = @transform_0, window_bounds = array<i64: 2, 1>}, {pipeline_mode = #tpu.pipeline_mode<synchronous>, transform_indices = @transform_1, window_bounds = array<i64: 16, 16>}, {pipeline_mode = #tpu.pipeline_mode<synchronous>, transform_indices = @transform_2, window_bounds = array<i64: 16, 256>}, {pipeline_mode = #tpu.pipeline_mode<synchronous>, transform_indices = @transform_3, window_bounds = array<i64: 32, 128>}, {pipeline_mode = #tpu.pipeline_mode<synchronous>, transform_indices = @transform_4, window_bounds = array<i64: 32, 128>}, {pipeline_mode = #tpu.pipeline_mode<synchronous>, transform_indices = @transform_5, window_bounds = array<i64: 1, 256>}, {pipeline_mode = #tpu.pipeline_mode<synchronous>, transform_indices = @transform_6, window_bounds = array<i64: 64, 64>}, {pipeline_mode = #tpu.pipeline_mode<synchronous>, transform_indices = @transform_7, window_bounds = array<i64: 64, 4>}, {pipeline_mode = #tpu.pipeline_mode<synchronous>, transform_indices = @transform_8, window_bounds = array<i64: 2, 4, 64>}, {pipeline_mode = #tpu.pipeline_mode<synchronous>, transform_indices = @transform_9, window_bounds = array<i64: 16, 4>}]} {
    %c0 = arith.constant 0 : index
    %c0_0 = arith.constant 0 : index
    %0 = vector.load %arg1[%c0, %c0_0] : memref<2x1xi32, #tpu.memory_space<vmem>>, vector<2x1xi32>
    %c0_1 = arith.constant 0 : index
    %c0_2 = arith.constant 0 : index
    %1 = vector.load %arg2[%c0_1, %c0_2] : memref<16x16xbf16, #tpu.memory_space<vmem>>, vector<16x16xbf16>
    %c0_3 = arith.constant 0 : index
    %c0_4 = arith.constant 0 : index
    %2 = vector.load %arg3[%c0_3, %c0_4] : memref<16x256xbf16, #tpu.memory_space<vmem>>, vector<16x256xbf16>
    %cst = arith.constant dense<0.000000e+00> : vector<16x256xf32>
    %3 = tpu.matmul %1, %2, %cst {dimension_numbers = #tpu.dot_dimension_numbers<[1], [0], [0], [1], [0, 0, 1, 1], [], []>} : vector<16x16xbf16>, vector<16x256xbf16>, vector<16x256xf32> -> vector<16x256xf32>
    %c0_5 = arith.constant 0 : index
    %c0_6 = arith.constant 0 : index
    %4 = vector.load %arg6[%c0_5, %c0_6] : memref<1x256xf32, #tpu.memory_space<vmem>>, vector<1x256xf32>
    %5 = vector.broadcast %4 : vector<1x256xf32> to vector<16x256xf32>
    %6 = arith.addf %3, %5 : vector<16x256xf32>
    %7 = vector.extract_strided_slice %6 {offsets = [0, 0], sizes = [2, 256], strides = [1, 1]} : vector<16x256xf32> to vector<2x256xf32>
    %c0_7 = arith.constant 0 : index
    %c0_8 = arith.constant 0 : index
    %c0_9 = arith.constant 0 : index
    %8 = vector.load %arg11[%c0_7, %c0_8, %c0_9] : memref<8x2x256xf32, #tpu.memory_space<vmem>>, vector<1x2x256xf32>
    %9 = vector.shape_cast %8 : vector<1x2x256xf32> to vector<2x256xf32>
    %10 = vector.shape_cast %7 : vector<2x256xf32> to vector<1x2x256xf32>
    tpu.vector_store %arg11[%c0_7, %c0_8, %c0_9], %10 {strides = array<i32>} : memref<8x2x256xf32, #tpu.memory_space<vmem>>, vector<1x2x256xf32>,
    %11 = vector.extract_strided_slice %6 {offsets = [2, 0], sizes = [2, 256], strides = [1, 1]} : vector<16x256xf32> to vector<2x256xf32>
    %c1 = arith.constant 1 : index
    %c0_10 = arith.constant 0 : index
    %c0_11 = arith.constant 0 : index
    %12 = vector.load %arg11[%c1, %c0_10, %c0_11] : memref<8x2x256xf32, #tpu.memory_space<vmem>>, vector<1x2x256xf32>
    %13 = vector.shape_cast %12 : vector<1x2x256xf32> to vector<2x256xf32>
    %14 = vector.shape_cast %11 : vector<2x256xf32> to vector<1x2x256xf32>
    tpu.vector_store %arg11[%c1, %c0_10, %c0_11], %14 {strides = array<i32>} : memref<8x2x256xf32, #tpu.memory_space<vmem>>, vector<1x2x256xf32>,
    %15 = vector.extract_strided_slice %6 {offsets = [4, 0], sizes = [2, 256], strides = [1, 1]} : vector<16x256xf32> to vector<2x256xf32>
    %c2 = arith.constant 2 : index
    %c0_12 = arith.constant 0 : index
    %c0_13 = arith.constant 0 : index
    %16 = vector.load %arg11[%c2, %c0_12, %c0_13] : memref<8x2x256xf32, #tpu.memory_space<vmem>>, vector<1x2x256xf32>
    %17 = vector.shape_cast %16 : vector<1x2x256xf32> to vector<2x256xf32>
    %18 = vector.shape_cast %15 : vector<2x256xf32> to vector<1x2x256xf32>
    tpu.vector_store %arg11[%c2, %c0_12, %c0_13], %18 {strides = array<i32>} : memref<8x2x256xf32, #tpu.memory_space<vmem>>, vector<1x2x256xf32>,
    %19 = vector.extract_strided_slice %6 {offsets = [6, 0], sizes = [2, 256], strides = [1, 1]} : vector<16x256xf32> to vector<2x256xf32>
    %c3 = arith.constant 3 : index
    %c0_14 = arith.constant 0 : index
    %c0_15 = arith.constant 0 : index
    %20 = vector.load %arg11[%c3, %c0_14, %c0_15] : memref<8x2x256xf32, #tpu.memory_space<vmem>>, vector<1x2x256xf32>
    %21 = vector.shape_cast %20 : vector<1x2x256xf32> to vector<2x256xf32>
    %22 = vector.shape_cast %19 : vector<2x256xf32> to vector<1x2x256xf32>
    tpu.vector_store %arg11[%c3, %c0_14, %c0_15], %22 {strides = array<i32>} : memref<8x2x256xf32, #tpu.memory_space<vmem>>, vector<1x2x256xf32>,
    %23 = vector.extract_strided_slice %6 {offsets = [8, 0], sizes = [2, 256], strides = [1, 1]} : vector<16x256xf32> to vector<2x256xf32>
    %c4 = arith.constant 4 : index
    %c0_16 = arith.constant 0 : index
    %c0_17 = arith.constant 0 : index
    %24 = vector.load %arg11[%c4, %c0_16, %c0_17] : memref<8x2x256xf32, #tpu.memory_space<vmem>>, vector<1x2x256xf32>
    %25 = vector.shape_cast %24 : vector<1x2x256xf32> to vector<2x256xf32>
    %26 = vector.shape_cast %23 : vector<2x256xf32> to vector<1x2x256xf32>
    tpu.vector_store %arg11[%c4, %c0_16, %c0_17], %26 {strides = array<i32>} : memref<8x2x256xf32, #tpu.memory_space<vmem>>, vector<1x2x256xf32>,
    %27 = vector.extract_strided_slice %6 {offsets = [10, 0], sizes = [2, 256], strides = [1, 1]} : vector<16x256xf32> to vector<2x256xf32>
    %c5 = arith.constant 5 : index
    %c0_18 = arith.constant 0 : index
    %c0_19 = arith.constant 0 : index
    %28 = vector.load %arg11[%c5, %c0_18, %c0_19] : memref<8x2x256xf32, #tpu.memory_space<vmem>>, vector<1x2x256xf32>
    %29 = vector.shape_cast %28 : vector<1x2x256xf32> to vector<2x256xf32>
    %30 = vector.shape_cast %27 : vector<2x256xf32> to vector<1x2x256xf32>
    tpu.vector_store %arg11[%c5, %c0_18, %c0_19], %30 {strides = array<i32>} : memref<8x2x256xf32, #tpu.memory_space<vmem>>, vector<1x2x256xf32>,
    %31 = vector.extract_strided_slice %6 {offsets = [12, 0], sizes = [2, 256], strides = [1, 1]} : vector<16x256xf32> to vector<2x256xf32>
    %c6 = arith.constant 6 : index
    %c0_20 = arith.constant 0 : index
    %c0_21 = arith.constant 0 : index
    %32 = vector.load %arg11[%c6, %c0_20, %c0_21] : memref<8x2x256xf32, #tpu.memory_space<vmem>>, vector<1x2x256xf32>
    %33 = vector.shape_cast %32 : vector<1x2x256xf32> to vector<2x256xf32>
    %34 = vector.shape_cast %31 : vector<2x256xf32> to vector<1x2x256xf32>
    tpu.vector_store %arg11[%c6, %c0_20, %c0_21], %34 {strides = array<i32>} : memref<8x2x256xf32, #tpu.memory_space<vmem>>, vector<1x2x256xf32>,
    %35 = vector.extract_strided_slice %6 {offsets = [14, 0], sizes = [2, 256], strides = [1, 1]} : vector<16x256xf32> to vector<2x256xf32>
    %c7 = arith.constant 7 : index
    %c0_22 = arith.constant 0 : index
    %c0_23 = arith.constant 0 : index
    %36 = vector.load %arg11[%c7, %c0_22, %c0_23] : memref<8x2x256xf32, #tpu.memory_space<vmem>>, vector<1x2x256xf32>
    %37 = vector.shape_cast %36 : vector<1x2x256xf32> to vector<2x256xf32>
    %38 = vector.shape_cast %35 : vector<2x256xf32> to vector<1x2x256xf32>
    tpu.vector_store %arg11[%c7, %c0_22, %c0_23], %38 {strides = array<i32>} : memref<8x2x256xf32, #tpu.memory_space<vmem>>, vector<1x2x256xf32>,
    %c0_24 = arith.constant 0 : index
    %c0_25 = arith.constant 0 : index
    %39 = vector.load %arg4[%c0_24, %c0_25] : memref<32x128xbf16, #tpu.memory_space<vmem>>, vector<32x128xbf16>
    %c0_26 = arith.constant 0 : index
    %c0_27 = arith.constant 0 : index
    %40 = vector.load %arg5[%c0_26, %c0_27] : memref<32x128xbf16, #tpu.memory_space<vmem>>, vector<32x128xbf16>
    %cst_28 = arith.constant 0.000000e+00 : f32
    %41 = vector.broadcast %cst_28 : f32 to vector<2x32xf32>
    %c0_29 = arith.constant 0 : index
    %c0_30 = arith.constant 0 : index
    %c0_31 = arith.constant 0 : index
    %42 = vector.load %arg11[%c0_29, %c0_30, %c0_31] : memref<8x2x256xf32, #tpu.memory_space<vmem>>, vector<1x2x128xf32>
    %43 = vector.shape_cast %42 : vector<1x2x128xf32> to vector<2x128xf32>
    %44 = arith.truncf %41 : vector<2x32xf32> to vector<2x32xbf16>
    %cst_32 = arith.constant dense<0.000000e+00> : vector<2x128xf32>
    %45 = tpu.matmul %44, %39, %cst_32 {dimension_numbers = #tpu.dot_dimension_numbers<[1], [0], [0], [1], [0, 0, 1, 1], [], []>} : vector<2x32xbf16>, vector<32x128xbf16>, vector<2x128xf32> -> vector<2x128xf32>
    %46 = arith.addf %43, %45 : vector<2x128xf32>
    %c7_33 = arith.constant 7 : index
    %c0_34 = arith.constant 0 : index
    %c128 = arith.constant 128 : index
    %47 = vector.load %arg11[%c7_33, %c0_34, %c128] : memref<8x2x256xf32, #tpu.memory_space<vmem>>, vector<1x2x128xf32>
    %48 = vector.shape_cast %47 : vector<1x2x128xf32> to vector<2x128xf32>
    %49 = arith.truncf %41 : vector<2x32xf32> to vector<2x32xbf16>
    %cst_35 = arith.constant dense<0.000000e+00> : vector<2x128xf32>
    %50 = tpu.matmul %49, %40, %cst_35 {dimension_numbers = #tpu.dot_dimension_numbers<[1], [0], [0], [1], [0, 0, 1, 1], [], []>} : vector<2x32xbf16>, vector<32x128xbf16>, vector<2x128xf32> -> vector<2x128xf32>
    %51 = arith.addf %48, %50 : vector<2x128xf32>
    %52 = arith.negf %46 : vector<2x128xf32>
    %53 = math.exp %52 : vector<2x128xf32>
    %cst_36 = arith.constant 1.000000e+00 : f32
    %54 = vector.broadcast %cst_36 : f32 to vector<2x128xf32>
    %55 = arith.addf %54, %53 : vector<2x128xf32>
    %56 = arith.divf %54, %55 : vector<2x128xf32>
    %57 = math.tanh %46 : vector<2x128xf32>
    %58 = vector.extract_strided_slice %56 {offsets = [0, 0], sizes = [2, 32], strides = [1, 1]} : vector<2x128xf32> to vector<2x32xf32>
    %59 = vector.extract_strided_slice %56 {offsets = [0, 32], sizes = [2, 32], strides = [1, 1]} : vector<2x128xf32> to vector<2x32xf32>
    %60 = vector.extract_strided_slice %56 {offsets = [0, 96], sizes = [2, 32], strides = [1, 1]} : vector<2x128xf32> to vector<2x32xf32>
    %61 = vector.extract_strided_slice %57 {offsets = [0, 64], sizes = [2, 32], strides = [1, 1]} : vector<2x128xf32> to vector<2x32xf32>
    %62 = arith.mulf %59, %41 : vector<2x32xf32>
    %63 = arith.mulf %58, %61 : vector<2x32xf32>
    %64 = arith.addf %62, %63 : vector<2x32xf32>
    %65 = math.tanh %64 : vector<2x32xf32>
    %66 = arith.mulf %60, %65 : vector<2x32xf32>
    %67 = arith.negf %51 : vector<2x128xf32>
    %68 = math.exp %67 : vector<2x128xf32>
    %cst_37 = arith.constant 1.000000e+00 : f32
    %69 = vector.broadcast %cst_37 : f32 to vector<2x128xf32>
    %70 = arith.addf %69, %68 : vector<2x128xf32>
    %71 = arith.divf %69, %70 : vector<2x128xf32>
    %72 = math.tanh %51 : vector<2x128xf32>
    %73 = vector.extract_strided_slice %71 {offsets = [0, 0], sizes = [2, 32], strides = [1, 1]} : vector<2x128xf32> to vector<2x32xf32>
    %74 = vector.extract_strided_slice %71 {offsets = [0, 32], sizes = [2, 32], strides = [1, 1]} : vector<2x128xf32> to vector<2x32xf32>
    %75 = vector.extract_strided_slice %71 {offsets = [0, 96], sizes = [2, 32], strides = [1, 1]} : vector<2x128xf32> to vector<2x32xf32>
    %76 = vector.extract_strided_slice %72 {offsets = [0, 64], sizes = [2, 32], strides = [1, 1]} : vector<2x128xf32> to vector<2x32xf32>
    %77 = arith.mulf %74, %41 : vector<2x32xf32>
    %78 = arith.mulf %73, %76 : vector<2x32xf32>
    %79 = arith.addf %77, %78 : vector<2x32xf32>
    %80 = math.tanh %79 : vector<2x32xf32>
    %81 = arith.mulf %75, %80 : vector<2x32xf32>
    %c0_i32 = arith.constant 0 : i32
    %82 = vector.broadcast %c0_i32 : i32 to vector<2x1xi32>
    %83 = arith.cmpi sgt, %0, %82 : vector<2x1xi32>
    %c7_i32 = arith.constant 7 : i32
    %84 = vector.broadcast %c7_i32 : i32 to vector<2x1xi32>
    %85 = arith.cmpi sgt, %0, %84 : vector<2x1xi32>
    %cst_38 = arith.constant 0.000000e+00 : f32
    %86 = vector.shape_cast %83 : vector<2x1xi1> to vector<2x1xi1>
    %87 = vector.broadcast %86 : vector<2x1xi1> to vector<2x32xi1>
    %88 = vector.broadcast %cst_38 : f32 to vector<2x32xf32>
    %89 = arith.select %87, %66, %88 : vector<2x32xi1>, vector<2x32xf32>
    %c0_39 = arith.constant 0 : index
    %c0_40 = arith.constant 0 : index
    %90 = vector.load %arg12[%c0_39, %c0_40] : memref<16x64xf32, #tpu.memory_space<vmem>>, vector<2x32xf32>
    tpu.vector_store %arg12[%c0_39, %c0_40], %89 {strides = array<i32>} : memref<16x64xf32, #tpu.memory_space<vmem>>, vector<2x32xf32>,
    %cst_41 = arith.constant 0.000000e+00 : f32
    %91 = vector.shape_cast %85 : vector<2x1xi1> to vector<2x1xi1>
    %92 = vector.broadcast %91 : vector<2x1xi1> to vector<2x32xi1>
    %93 = vector.broadcast %cst_41 : f32 to vector<2x32xf32>
    %94 = arith.select %92, %81, %93 : vector<2x32xi1>, vector<2x32xf32>
    %c14 = arith.constant 14 : index
    %c32 = arith.constant 32 : index
    %95 = vector.load %arg12[%c14, %c32] : memref<16x64xf32, #tpu.memory_space<vmem>>, vector<2x32xf32>
    tpu.vector_store %arg12[%c14, %c32], %94 {strides = array<i32>} : memref<16x64xf32, #tpu.memory_space<vmem>>, vector<2x32xf32>,
    %96 = vector.shape_cast %83 : vector<2x1xi1> to vector<2x1xi1>
    %97 = vector.broadcast %96 : vector<2x1xi1> to vector<2x32xi1>
    %98 = arith.select %97, %66, %41 : vector<2x32xi1>, vector<2x32xf32>
    %99 = vector.shape_cast %83 : vector<2x1xi1> to vector<2x1xi1>
    %100 = vector.broadcast %99 : vector<2x1xi1> to vector<2x32xi1>
    %101 = arith.select %100, %64, %41 : vector<2x32xi1>, vector<2x32xf32>
    %102 = vector.shape_cast %85 : vector<2x1xi1> to vector<2x1xi1>
    %103 = vector.broadcast %102 : vector<2x1xi1> to vector<2x32xi1>
    %104 = arith.select %103, %81, %41 : vector<2x32xi1>, vector<2x32xf32>
    %105 = vector.shape_cast %85 : vector<2x1xi1> to vector<2x1xi1>
    %106 = vector.broadcast %105 : vector<2x1xi1> to vector<2x32xi1>
    %107 = arith.select %106, %79, %41 : vector<2x32xi1>, vector<2x32xf32>
    %c1_42 = arith.constant 1 : index
    %c0_43 = arith.constant 0 : index
    %c0_44 = arith.constant 0 : index
    %108 = vector.load %arg11[%c1_42, %c0_43, %c0_44] : memref<8x2x256xf32, #tpu.memory_space<vmem>>, vector<1x2x128xf32>
    %109 = vector.shape_cast %108 : vector<1x2x128xf32> to vector<2x128xf32>
    %110 = arith.truncf %98 : vector<2x32xf32> to vector<2x32xbf16>
    %cst_45 = arith.constant dense<0.000000e+00> : vector<2x128xf32>
    %111 = tpu.matmul %110, %39, %cst_45 {dimension_numbers = #tpu.dot_dimension_numbers<[1], [0], [0], [1], [0, 0, 1, 1], [], []>} : vector<2x32xbf16>, vector<32x128xbf16>, vector<2x128xf32> -> vector<2x128xf32>
    %112 = arith.addf %109, %111 : vector<2x128xf32>
    %c6_46 = arith.constant 6 : index
    %c0_47 = arith.constant 0 : index
    %c128_48 = arith.constant 128 : index
    %113 = vector.load %arg11[%c6_46, %c0_47, %c128_48] : memref<8x2x256xf32, #tpu.memory_space<vmem>>, vector<1x2x128xf32>
    %114 = vector.shape_cast %113 : vector<1x2x128xf32> to vector<2x128xf32>
    %115 = arith.truncf %104 : vector<2x32xf32> to vector<2x32xbf16>
    %cst_49 = arith.constant dense<0.000000e+00> : vector<2x128xf32>
    %116 = tpu.matmul %115, %40, %cst_49 {dimension_numbers = #tpu.dot_dimension_numbers<[1], [0], [0], [1], [0, 0, 1, 1], [], []>} : vector<2x32xbf16>, vector<32x128xbf16>, vector<2x128xf32> -> vector<2x128xf32>
    %117 = arith.addf %114, %116 : vector<2x128xf32>
    %118 = arith.negf %112 : vector<2x128xf32>
    %119 = math.exp %118 : vector<2x128xf32>
    %cst_50 = arith.constant 1.000000e+00 : f32
    %120 = vector.broadcast %cst_50 : f32 to vector<2x128xf32>
    %121 = arith.addf %120, %119 : vector<2x128xf32>
    %122 = arith.divf %120, %121 : vector<2x128xf32>
    %123 = math.tanh %112 : vector<2x128xf32>
    %124 = vector.extract_strided_slice %122 {offsets = [0, 0], sizes = [2, 32], strides = [1, 1]} : vector<2x128xf32> to vector<2x32xf32>
    %125 = vector.extract_strided_slice %122 {offsets = [0, 32], sizes = [2, 32], strides = [1, 1]} : vector<2x128xf32> to vector<2x32xf32>
    %126 = vector.extract_strided_slice %122 {offsets = [0, 96], sizes = [2, 32], strides = [1, 1]} : vector<2x128xf32> to vector<2x32xf32>
    %127 = vector.extract_strided_slice %123 {offsets = [0, 64], sizes = [2, 32], strides = [1, 1]} : vector<2x128xf32> to vector<2x32xf32>
    %128 = arith.mulf %125, %101 : vector<2x32xf32>
    %129 = arith.mulf %124, %127 : vector<2x32xf32>
    %130 = arith.addf %128, %129 : vector<2x32xf32>
    %131 = math.tanh %130 : vector<2x32xf32>
    %132 = arith.mulf %126, %131 : vector<2x32xf32>
    %133 = arith.negf %117 : vector<2x128xf32>
    %134 = math.exp %133 : vector<2x128xf32>
    %cst_51 = arith.constant 1.000000e+00 : f32
    %135 = vector.broadcast %cst_51 : f32 to vector<2x128xf32>
    %136 = arith.addf %135, %134 : vector<2x128xf32>
    %137 = arith.divf %135, %136 : vector<2x128xf32>
    %138 = math.tanh %117 : vector<2x128xf32>
    %139 = vector.extract_strided_slice %137 {offsets = [0, 0], sizes = [2, 32], strides = [1, 1]} : vector<2x128xf32> to vector<2x32xf32>
    %140 = vector.extract_strided_slice %137 {offsets = [0, 32], sizes = [2, 32], strides = [1, 1]} : vector<2x128xf32> to vector<2x32xf32>
    %141 = vector.extract_strided_slice %137 {offsets = [0, 96], sizes = [2, 32], strides = [1, 1]} : vector<2x128xf32> to vector<2x32xf32>
    %142 = vector.extract_strided_slice %138 {offsets = [0, 64], sizes = [2, 32], strides = [1, 1]} : vector<2x128xf32> to vector<2x32xf32>
    %143 = arith.mulf %140, %107 : vector<2x32xf32>
    %144 = arith.mulf %139, %142 : vector<2x32xf32>
    %145 = arith.addf %143, %144 : vector<2x32xf32>
    %146 = math.tanh %145 : vector<2x32xf32>
    %147 = arith.mulf %141, %146 : vector<2x32xf32>
    %c1_i32 = arith.constant 1 : i32
    %148 = vector.broadcast %c1_i32 : i32 to vector<2x1xi32>
    %149 = arith.cmpi sgt, %0, %148 : vector<2x1xi32>
    %c6_i32 = arith.constant 6 : i32
    %150 = vector.broadcast %c6_i32 : i32 to vector<2x1xi32>
    %151 = arith.cmpi sgt, %0, %150 : vector<2x1xi32>
    %cst_52 = arith.constant 0.000000e+00 : f32
    %152 = vector.shape_cast %149 : vector<2x1xi1> to vector<2x1xi1>
    %153 = vector.broadcast %152 : vector<2x1xi1> to vector<2x32xi1>
    %154 = vector.broadcast %cst_52 : f32 to vector<2x32xf32>
    %155 = arith.select %153, %132, %154 : vector<2x32xi1>, vector<2x32xf32>
    %c2_53 = arith.constant 2 : index
    %c0_54 = arith.constant 0 : index
    %156 = vector.load %arg12[%c2_53, %c0_54] : memref<16x64xf32, #tpu.memory_space<vmem>>, vector<2x32xf32>
    tpu.vector_store %arg12[%c2_53, %c0_54], %155 {strides = array<i32>} : memref<16x64xf32, #tpu.memory_space<vmem>>, vector<2x32xf32>,
    %cst_55 = arith.constant 0.000000e+00 : f32
    %157 = vector.shape_cast %151 : vector<2x1xi1> to vector<2x1xi1>
    %158 = vector.broadcast %157 : vector<2x1xi1> to vector<2x32xi1>
    %159 = vector.broadcast %cst_55 : f32 to vector<2x32xf32>
    %160 = arith.select %158, %147, %159 : vector<2x32xi1>, vector<2x32xf32>
    %c12 = arith.constant 12 : index
    %c32_56 = arith.constant 32 : index
    %161 = vector.load %arg12[%c12, %c32_56] : memref<16x64xf32, #tpu.memory_space<vmem>>, vector<2x32xf32>
    tpu.vector_store %arg12[%c12, %c32_56], %160 {strides = array<i32>} : memref<16x64xf32, #tpu.memory_space<vmem>>, vector<2x32xf32>,
    %162 = vector.shape_cast %149 : vector<2x1xi1> to vector<2x1xi1>
    %163 = vector.broadcast %162 : vector<2x1xi1> to vector<2x32xi1>
    %164 = arith.select %163, %132, %98 : vector<2x32xi1>, vector<2x32xf32>
    %165 = vector.shape_cast %149 : vector<2x1xi1> to vector<2x1xi1>
    %166 = vector.broadcast %165 : vector<2x1xi1> to vector<2x32xi1>
    %167 = arith.select %166, %130, %101 : vector<2x32xi1>, vector<2x32xf32>
    %168 = vector.shape_cast %151 : vector<2x1xi1> to vector<2x1xi1>
    %169 = vector.broadcast %168 : vector<2x1xi1> to vector<2x32xi1>
    %170 = arith.select %169, %147, %104 : vector<2x32xi1>, vector<2x32xf32>
    %171 = vector.shape_cast %151 : vector<2x1xi1> to vector<2x1xi1>
    %172 = vector.broadcast %171 : vector<2x1xi1> to vector<2x32xi1>
    %173 = arith.select %172, %145, %107 : vector<2x32xi1>, vector<2x32xf32>
    %c2_57 = arith.constant 2 : index
    %c0_58 = arith.constant 0 : index
    %c0_59 = arith.constant 0 : index
    %174 = vector.load %arg11[%c2_57, %c0_58, %c0_59] : memref<8x2x256xf32, #tpu.memory_space<vmem>>, vector<1x2x128xf32>
    %175 = vector.shape_cast %174 : vector<1x2x128xf32> to vector<2x128xf32>
    %176 = arith.truncf %164 : vector<2x32xf32> to vector<2x32xbf16>
    %cst_60 = arith.constant dense<0.000000e+00> : vector<2x128xf32>
    %177 = tpu.matmul %176, %39, %cst_60 {dimension_numbers = #tpu.dot_dimension_numbers<[1], [0], [0], [1], [0, 0, 1, 1], [], []>} : vector<2x32xbf16>, vector<32x128xbf16>, vector<2x128xf32> -> vector<2x128xf32>
    %178 = arith.addf %175, %177 : vector<2x128xf32>
    %c5_61 = arith.constant 5 : index
    %c0_62 = arith.constant 0 : index
    %c128_63 = arith.constant 128 : index
    %179 = vector.load %arg11[%c5_61, %c0_62, %c128_63] : memref<8x2x256xf32, #tpu.memory_space<vmem>>, vector<1x2x128xf32>
    %180 = vector.shape_cast %179 : vector<1x2x128xf32> to vector<2x128xf32>
    %181 = arith.truncf %170 : vector<2x32xf32> to vector<2x32xbf16>
    %cst_64 = arith.constant dense<0.000000e+00> : vector<2x128xf32>
    %182 = tpu.matmul %181, %40, %cst_64 {dimension_numbers = #tpu.dot_dimension_numbers<[1], [0], [0], [1], [0, 0, 1, 1], [], []>} : vector<2x32xbf16>, vector<32x128xbf16>, vector<2x128xf32> -> vector<2x128xf32>
    %183 = arith.addf %180, %182 : vector<2x128xf32>
    %184 = arith.negf %178 : vector<2x128xf32>
    %185 = math.exp %184 : vector<2x128xf32>
    %cst_65 = arith.constant 1.000000e+00 : f32
    %186 = vector.broadcast %cst_65 : f32 to vector<2x128xf32>
    %187 = arith.addf %186, %185 : vector<2x128xf32>
    %188 = arith.divf %186, %187 : vector<2x128xf32>
    %189 = math.tanh %178 : vector<2x128xf32>
    %190 = vector.extract_strided_slice %188 {offsets = [0, 0], sizes = [2, 32], strides = [1, 1]} : vector<2x128xf32> to vector<2x32xf32>
    %191 = vector.extract_strided_slice %188 {offsets = [0, 32], sizes = [2, 32], strides = [1, 1]} : vector<2x128xf32> to vector<2x32xf32>
    %192 = vector.extract_strided_slice %188 {offsets = [0, 96], sizes = [2, 32], strides = [1, 1]} : vector<2x128xf32> to vector<2x32xf32>
    %193 = vector.extract_strided_slice %189 {offsets = [0, 64], sizes = [2, 32], strides = [1, 1]} : vector<2x128xf32> to vector<2x32xf32>
    %194 = arith.mulf %191, %167 : vector<2x32xf32>
    %195 = arith.mulf %190, %193 : vector<2x32xf32>
    %196 = arith.addf %194, %195 : vector<2x32xf32>
    %197 = math.tanh %196 : vector<2x32xf32>
    %198 = arith.mulf %192, %197 : vector<2x32xf32>
    %199 = arith.negf %183 : vector<2x128xf32>
    %200 = math.exp %199 : vector<2x128xf32>
    %cst_66 = arith.constant 1.000000e+00 : f32
    %201 = vector.broadcast %cst_66 : f32 to vector<2x128xf32>
    %202 = arith.addf %201, %200 : vector<2x128xf32>
    %203 = arith.divf %201, %202 : vector<2x128xf32>
    %204 = math.tanh %183 : vector<2x128xf32>
    %205 = vector.extract_strided_slice %203 {offsets = [0, 0], sizes = [2, 32], strides = [1, 1]} : vector<2x128xf32> to vector<2x32xf32>
    %206 = vector.extract_strided_slice %203 {offsets = [0, 32], sizes = [2, 32], strides = [1, 1]} : vector<2x128xf32> to vector<2x32xf32>
    %207 = vector.extract_strided_slice %203 {offsets = [0, 96], sizes = [2, 32], strides = [1, 1]} : vector<2x128xf32> to vector<2x32xf32>
    %208 = vector.extract_strided_slice %204 {offsets = [0, 64], sizes = [2, 32], strides = [1, 1]} : vector<2x128xf32> to vector<2x32xf32>
    %209 = arith.mulf %206, %173 : vector<2x32xf32>
    %210 = arith.mulf %205, %208 : vector<2x32xf32>
    %211 = arith.addf %209, %210 : vector<2x32xf32>
    %212 = math.tanh %211 : vector<2x32xf32>
    %213 = arith.mulf %207, %212 : vector<2x32xf32>
    %c2_i32 = arith.constant 2 : i32
    %214 = vector.broadcast %c2_i32 : i32 to vector<2x1xi32>
    %215 = arith.cmpi sgt, %0, %214 : vector<2x1xi32>
    %c5_i32 = arith.constant 5 : i32
    %216 = vector.broadcast %c5_i32 : i32 to vector<2x1xi32>
    %217 = arith.cmpi sgt, %0, %216 : vector<2x1xi32>
    %cst_67 = arith.constant 0.000000e+00 : f32
    %218 = vector.shape_cast %215 : vector<2x1xi1> to vector<2x1xi1>
    %219 = vector.broadcast %218 : vector<2x1xi1> to vector<2x32xi1>
    %220 = vector.broadcast %cst_67 : f32 to vector<2x32xf32>
    %221 = arith.select %219, %198, %220 : vector<2x32xi1>, vector<2x32xf32>
    %c4_68 = arith.constant 4 : index
    %c0_69 = arith.constant 0 : index
    %222 = vector.load %arg12[%c4_68, %c0_69] : memref<16x64xf32, #tpu.memory_space<vmem>>, vector<2x32xf32>
    tpu.vector_store %arg12[%c4_68, %c0_69], %221 {strides = array<i32>} : memref<16x64xf32, #tpu.memory_space<vmem>>, vector<2x32xf32>,
    %cst_70 = arith.constant 0.000000e+00 : f32
    %223 = vector.shape_cast %217 : vector<2x1xi1> to vector<2x1xi1>
    %224 = vector.broadcast %223 : vector<2x1xi1> to vector<2x32xi1>
    %225 = vector.broadcast %cst_70 : f32 to vector<2x32xf32>
    %226 = arith.select %224, %213, %225 : vector<2x32xi1>, vector<2x32xf32>
    %c10 = arith.constant 10 : index
    %c32_71 = arith.constant 32 : index
    %227 = vector.load %arg12[%c10, %c32_71] : memref<16x64xf32, #tpu.memory_space<vmem>>, vector<2x32xf32>
    tpu.vector_store %arg12[%c10, %c32_71], %226 {strides = array<i32>} : memref<16x64xf32, #tpu.memory_space<vmem>>, vector<2x32xf32>,
    %228 = vector.shape_cast %215 : vector<2x1xi1> to vector<2x1xi1>
    %229 = vector.broadcast %228 : vector<2x1xi1> to vector<2x32xi1>
    %230 = arith.select %229, %198, %164 : vector<2x32xi1>, vector<2x32xf32>
    %231 = vector.shape_cast %215 : vector<2x1xi1> to vector<2x1xi1>
    %232 = vector.broadcast %231 : vector<2x1xi1> to vector<2x32xi1>
    %233 = arith.select %232, %196, %167 : vector<2x32xi1>, vector<2x32xf32>
    %234 = vector.shape_cast %217 : vector<2x1xi1> to vector<2x1xi1>
    %235 = vector.broadcast %234 : vector<2x1xi1> to vector<2x32xi1>
    %236 = arith.select %235, %213, %170 : vector<2x32xi1>, vector<2x32xf32>
    %237 = vector.shape_cast %217 : vector<2x1xi1> to vector<2x1xi1>
    %238 = vector.broadcast %237 : vector<2x1xi1> to vector<2x32xi1>
    %239 = arith.select %238, %211, %173 : vector<2x32xi1>, vector<2x32xf32>
    %c3_72 = arith.constant 3 : index
    %c0_73 = arith.constant 0 : index
    %c0_74 = arith.constant 0 : index
    %240 = vector.load %arg11[%c3_72, %c0_73, %c0_74] : memref<8x2x256xf32, #tpu.memory_space<vmem>>, vector<1x2x128xf32>
    %241 = vector.shape_cast %240 : vector<1x2x128xf32> to vector<2x128xf32>
    %242 = arith.truncf %230 : vector<2x32xf32> to vector<2x32xbf16>
    %cst_75 = arith.constant dense<0.000000e+00> : vector<2x128xf32>
    %243 = tpu.matmul %242, %39, %cst_75 {dimension_numbers = #tpu.dot_dimension_numbers<[1], [0], [0], [1], [0, 0, 1, 1], [], []>} : vector<2x32xbf16>, vector<32x128xbf16>, vector<2x128xf32> -> vector<2x128xf32>
    %244 = arith.addf %241, %243 : vector<2x128xf32>
    %c4_76 = arith.constant 4 : index
    %c0_77 = arith.constant 0 : index
    %c128_78 = arith.constant 128 : index
    %245 = vector.load %arg11[%c4_76, %c0_77, %c128_78] : memref<8x2x256xf32, #tpu.memory_space<vmem>>, vector<1x2x128xf32>
    %246 = vector.shape_cast %245 : vector<1x2x128xf32> to vector<2x128xf32>
    %247 = arith.truncf %236 : vector<2x32xf32> to vector<2x32xbf16>
    %cst_79 = arith.constant dense<0.000000e+00> : vector<2x128xf32>
    %248 = tpu.matmul %247, %40, %cst_79 {dimension_numbers = #tpu.dot_dimension_numbers<[1], [0], [0], [1], [0, 0, 1, 1], [], []>} : vector<2x32xbf16>, vector<32x128xbf16>, vector<2x128xf32> -> vector<2x128xf32>
    %249 = arith.addf %246, %248 : vector<2x128xf32>
    %250 = arith.negf %244 : vector<2x128xf32>
    %251 = math.exp %250 : vector<2x128xf32>
    %cst_80 = arith.constant 1.000000e+00 : f32
    %252 = vector.broadcast %cst_80 : f32 to vector<2x128xf32>
    %253 = arith.addf %252, %251 : vector<2x128xf32>
    %254 = arith.divf %252, %253 : vector<2x128xf32>
    %255 = math.tanh %244 : vector<2x128xf32>
    %256 = vector.extract_strided_slice %254 {offsets = [0, 0], sizes = [2, 32], strides = [1, 1]} : vector<2x128xf32> to vector<2x32xf32>
    %257 = vector.extract_strided_slice %254 {offsets = [0, 32], sizes = [2, 32], strides = [1, 1]} : vector<2x128xf32> to vector<2x32xf32>
    %258 = vector.extract_strided_slice %254 {offsets = [0, 96], sizes = [2, 32], strides = [1, 1]} : vector<2x128xf32> to vector<2x32xf32>
    %259 = vector.extract_strided_slice %255 {offsets = [0, 64], sizes = [2, 32], strides = [1, 1]} : vector<2x128xf32> to vector<2x32xf32>
    %260 = arith.mulf %257, %233 : vector<2x32xf32>
    %261 = arith.mulf %256, %259 : vector<2x32xf32>
    %262 = arith.addf %260, %261 : vector<2x32xf32>
    %263 = math.tanh %262 : vector<2x32xf32>
    %264 = arith.mulf %258, %263 : vector<2x32xf32>
    %265 = arith.negf %249 : vector<2x128xf32>
    %266 = math.exp %265 : vector<2x128xf32>
    %cst_81 = arith.constant 1.000000e+00 : f32
    %267 = vector.broadcast %cst_81 : f32 to vector<2x128xf32>
    %268 = arith.addf %267, %266 : vector<2x128xf32>
    %269 = arith.divf %267, %268 : vector<2x128xf32>
    %270 = math.tanh %249 : vector<2x128xf32>
    %271 = vector.extract_strided_slice %269 {offsets = [0, 0], sizes = [2, 32], strides = [1, 1]} : vector<2x128xf32> to vector<2x32xf32>
    %272 = vector.extract_strided_slice %269 {offsets = [0, 32], sizes = [2, 32], strides = [1, 1]} : vector<2x128xf32> to vector<2x32xf32>
    %273 = vector.extract_strided_slice %269 {offsets = [0, 96], sizes = [2, 32], strides = [1, 1]} : vector<2x128xf32> to vector<2x32xf32>
    %274 = vector.extract_strided_slice %270 {offsets = [0, 64], sizes = [2, 32], strides = [1, 1]} : vector<2x128xf32> to vector<2x32xf32>
    %275 = arith.mulf %272, %239 : vector<2x32xf32>
    %276 = arith.mulf %271, %274 : vector<2x32xf32>
    %277 = arith.addf %275, %276 : vector<2x32xf32>
    %278 = math.tanh %277 : vector<2x32xf32>
    %279 = arith.mulf %273, %278 : vector<2x32xf32>
    %c3_i32 = arith.constant 3 : i32
    %280 = vector.broadcast %c3_i32 : i32 to vector<2x1xi32>
    %281 = arith.cmpi sgt, %0, %280 : vector<2x1xi32>
    %c4_i32 = arith.constant 4 : i32
    %282 = vector.broadcast %c4_i32 : i32 to vector<2x1xi32>
    %283 = arith.cmpi sgt, %0, %282 : vector<2x1xi32>
    %cst_82 = arith.constant 0.000000e+00 : f32
    %284 = vector.shape_cast %281 : vector<2x1xi1> to vector<2x1xi1>
    %285 = vector.broadcast %284 : vector<2x1xi1> to vector<2x32xi1>
    %286 = vector.broadcast %cst_82 : f32 to vector<2x32xf32>
    %287 = arith.select %285, %264, %286 : vector<2x32xi1>, vector<2x32xf32>
    %c6_83 = arith.constant 6 : index
    %c0_84 = arith.constant 0 : index
    %288 = vector.load %arg12[%c6_83, %c0_84] : memref<16x64xf32, #tpu.memory_space<vmem>>, vector<2x32xf32>
    tpu.vector_store %arg12[%c6_83, %c0_84], %287 {strides = array<i32>} : memref<16x64xf32, #tpu.memory_space<vmem>>, vector<2x32xf32>,
    %cst_85 = arith.constant 0.000000e+00 : f32
    %289 = vector.shape_cast %283 : vector<2x1xi1> to vector<2x1xi1>
    %290 = vector.broadcast %289 : vector<2x1xi1> to vector<2x32xi1>
    %291 = vector.broadcast %cst_85 : f32 to vector<2x32xf32>
    %292 = arith.select %290, %279, %291 : vector<2x32xi1>, vector<2x32xf32>
    %c8 = arith.constant 8 : index
    %c32_86 = arith.constant 32 : index
    %293 = vector.load %arg12[%c8, %c32_86] : memref<16x64xf32, #tpu.memory_space<vmem>>, vector<2x32xf32>
    tpu.vector_store %arg12[%c8, %c32_86], %292 {strides = array<i32>} : memref<16x64xf32, #tpu.memory_space<vmem>>, vector<2x32xf32>,
    %294 = vector.shape_cast %281 : vector<2x1xi1> to vector<2x1xi1>
    %295 = vector.broadcast %294 : vector<2x1xi1> to vector<2x32xi1>
    %296 = arith.select %295, %264, %230 : vector<2x32xi1>, vector<2x32xf32>
    %297 = vector.shape_cast %281 : vector<2x1xi1> to vector<2x1xi1>
    %298 = vector.broadcast %297 : vector<2x1xi1> to vector<2x32xi1>
    %299 = arith.select %298, %262, %233 : vector<2x32xi1>, vector<2x32xf32>
    %300 = vector.shape_cast %283 : vector<2x1xi1> to vector<2x1xi1>
    %301 = vector.broadcast %300 : vector<2x1xi1> to vector<2x32xi1>
    %302 = arith.select %301, %279, %236 : vector<2x32xi1>, vector<2x32xf32>
    %303 = vector.shape_cast %283 : vector<2x1xi1> to vector<2x1xi1>
    %304 = vector.broadcast %303 : vector<2x1xi1> to vector<2x32xi1>
    %305 = arith.select %304, %277, %239 : vector<2x32xi1>, vector<2x32xf32>
    %c4_87 = arith.constant 4 : index
    %c0_88 = arith.constant 0 : index
    %c0_89 = arith.constant 0 : index
    %306 = vector.load %arg11[%c4_87, %c0_88, %c0_89] : memref<8x2x256xf32, #tpu.memory_space<vmem>>, vector<1x2x128xf32>
    %307 = vector.shape_cast %306 : vector<1x2x128xf32> to vector<2x128xf32>
    %308 = arith.truncf %296 : vector<2x32xf32> to vector<2x32xbf16>
    %cst_90 = arith.constant dense<0.000000e+00> : vector<2x128xf32>
    %309 = tpu.matmul %308, %39, %cst_90 {dimension_numbers = #tpu.dot_dimension_numbers<[1], [0], [0], [1], [0, 0, 1, 1], [], []>} : vector<2x32xbf16>, vector<32x128xbf16>, vector<2x128xf32> -> vector<2x128xf32>
    %310 = arith.addf %307, %309 : vector<2x128xf32>
    %c3_91 = arith.constant 3 : index
    %c0_92 = arith.constant 0 : index
    %c128_93 = arith.constant 128 : index
    %311 = vector.load %arg11[%c3_91, %c0_92, %c128_93] : memref<8x2x256xf32, #tpu.memory_space<vmem>>, vector<1x2x128xf32>
    %312 = vector.shape_cast %311 : vector<1x2x128xf32> to vector<2x128xf32>
    %313 = arith.truncf %302 : vector<2x32xf32> to vector<2x32xbf16>
    %cst_94 = arith.constant dense<0.000000e+00> : vector<2x128xf32>
    %314 = tpu.matmul %313, %40, %cst_94 {dimension_numbers = #tpu.dot_dimension_numbers<[1], [0], [0], [1], [0, 0, 1, 1], [], []>} : vector<2x32xbf16>, vector<32x128xbf16>, vector<2x128xf32> -> vector<2x128xf32>
    %315 = arith.addf %312, %314 : vector<2x128xf32>
    %316 = arith.negf %310 : vector<2x128xf32>
    %317 = math.exp %316 : vector<2x128xf32>
    %cst_95 = arith.constant 1.000000e+00 : f32
    %318 = vector.broadcast %cst_95 : f32 to vector<2x128xf32>
    %319 = arith.addf %318, %317 : vector<2x128xf32>
    %320 = arith.divf %318, %319 : vector<2x128xf32>
    %321 = math.tanh %310 : vector<2x128xf32>
    %322 = vector.extract_strided_slice %320 {offsets = [0, 0], sizes = [2, 32], strides = [1, 1]} : vector<2x128xf32> to vector<2x32xf32>
    %323 = vector.extract_strided_slice %320 {offsets = [0, 32], sizes = [2, 32], strides = [1, 1]} : vector<2x128xf32> to vector<2x32xf32>
    %324 = vector.extract_strided_slice %320 {offsets = [0, 96], sizes = [2, 32], strides = [1, 1]} : vector<2x128xf32> to vector<2x32xf32>
    %325 = vector.extract_strided_slice %321 {offsets = [0, 64], sizes = [2, 32], strides = [1, 1]} : vector<2x128xf32> to vector<2x32xf32>
    %326 = arith.mulf %323, %299 : vector<2x32xf32>
    %327 = arith.mulf %322, %325 : vector<2x32xf32>
    %328 = arith.addf %326, %327 : vector<2x32xf32>
    %329 = math.tanh %328 : vector<2x32xf32>
    %330 = arith.mulf %324, %329 : vector<2x32xf32>
    %331 = arith.negf %315 : vector<2x128xf32>
    %332 = math.exp %331 : vector<2x128xf32>
    %cst_96 = arith.constant 1.000000e+00 : f32
    %333 = vector.broadcast %cst_96 : f32 to vector<2x128xf32>
    %334 = arith.addf %333, %332 : vector<2x128xf32>
    %335 = arith.divf %333, %334 : vector<2x128xf32>
    %336 = math.tanh %315 : vector<2x128xf32>
    %337 = vector.extract_strided_slice %335 {offsets = [0, 0], sizes = [2, 32], strides = [1, 1]} : vector<2x128xf32> to vector<2x32xf32>
    %338 = vector.extract_strided_slice %335 {offsets = [0, 32], sizes = [2, 32], strides = [1, 1]} : vector<2x128xf32> to vector<2x32xf32>
    %339 = vector.extract_strided_slice %335 {offsets = [0, 96], sizes = [2, 32], strides = [1, 1]} : vector<2x128xf32> to vector<2x32xf32>
    %340 = vector.extract_strided_slice %336 {offsets = [0, 64], sizes = [2, 32], strides = [1, 1]} : vector<2x128xf32> to vector<2x32xf32>
    %341 = arith.mulf %338, %305 : vector<2x32xf32>
    %342 = arith.mulf %337, %340 : vector<2x32xf32>
    %343 = arith.addf %341, %342 : vector<2x32xf32>
    %344 = math.tanh %343 : vector<2x32xf32>
    %345 = arith.mulf %339, %344 : vector<2x32xf32>
    %c4_i32_97 = arith.constant 4 : i32
    %346 = vector.broadcast %c4_i32_97 : i32 to vector<2x1xi32>
    %347 = arith.cmpi sgt, %0, %346 : vector<2x1xi32>
    %c3_i32_98 = arith.constant 3 : i32
    %348 = vector.broadcast %c3_i32_98 : i32 to vector<2x1xi32>
    %349 = arith.cmpi sgt, %0, %348 : vector<2x1xi32>
    %cst_99 = arith.constant 0.000000e+00 : f32
    %350 = vector.shape_cast %347 : vector<2x1xi1> to vector<2x1xi1>
    %351 = vector.broadcast %350 : vector<2x1xi1> to vector<2x32xi1>
    %352 = vector.broadcast %cst_99 : f32 to vector<2x32xf32>
    %353 = arith.select %351, %330, %352 : vector<2x32xi1>, vector<2x32xf32>
    %c8_100 = arith.constant 8 : index
    %c0_101 = arith.constant 0 : index
    %354 = vector.load %arg12[%c8_100, %c0_101] : memref<16x64xf32, #tpu.memory_space<vmem>>, vector<2x32xf32>
    tpu.vector_store %arg12[%c8_100, %c0_101], %353 {strides = array<i32>} : memref<16x64xf32, #tpu.memory_space<vmem>>, vector<2x32xf32>,
    %cst_102 = arith.constant 0.000000e+00 : f32
    %355 = vector.shape_cast %349 : vector<2x1xi1> to vector<2x1xi1>
    %356 = vector.broadcast %355 : vector<2x1xi1> to vector<2x32xi1>
    %357 = vector.broadcast %cst_102 : f32 to vector<2x32xf32>
    %358 = arith.select %356, %345, %357 : vector<2x32xi1>, vector<2x32xf32>
    %c6_103 = arith.constant 6 : index
    %c32_104 = arith.constant 32 : index
    %359 = vector.load %arg12[%c6_103, %c32_104] : memref<16x64xf32, #tpu.memory_space<vmem>>, vector<2x32xf32>
    tpu.vector_store %arg12[%c6_103, %c32_104], %358 {strides = array<i32>} : memref<16x64xf32, #tpu.memory_space<vmem>>, vector<2x32xf32>,
    %360 = vector.shape_cast %347 : vector<2x1xi1> to vector<2x1xi1>
    %361 = vector.broadcast %360 : vector<2x1xi1> to vector<2x32xi1>
    %362 = arith.select %361, %330, %296 : vector<2x32xi1>, vector<2x32xf32>
    %363 = vector.shape_cast %347 : vector<2x1xi1> to vector<2x1xi1>
    %364 = vector.broadcast %363 : vector<2x1xi1> to vector<2x32xi1>
    %365 = arith.select %364, %328, %299 : vector<2x32xi1>, vector<2x32xf32>
    %366 = vector.shape_cast %349 : vector<2x1xi1> to vector<2x1xi1>
    %367 = vector.broadcast %366 : vector<2x1xi1> to vector<2x32xi1>
    %368 = arith.select %367, %345, %302 : vector<2x32xi1>, vector<2x32xf32>
    %369 = vector.shape_cast %349 : vector<2x1xi1> to vector<2x1xi1>
    %370 = vector.broadcast %369 : vector<2x1xi1> to vector<2x32xi1>
    %371 = arith.select %370, %343, %305 : vector<2x32xi1>, vector<2x32xf32>
    %c5_105 = arith.constant 5 : index
    %c0_106 = arith.constant 0 : index
    %c0_107 = arith.constant 0 : index
    %372 = vector.load %arg11[%c5_105, %c0_106, %c0_107] : memref<8x2x256xf32, #tpu.memory_space<vmem>>, vector<1x2x128xf32>
    %373 = vector.shape_cast %372 : vector<1x2x128xf32> to vector<2x128xf32>
    %374 = arith.truncf %362 : vector<2x32xf32> to vector<2x32xbf16>
    %cst_108 = arith.constant dense<0.000000e+00> : vector<2x128xf32>
    %375 = tpu.matmul %374, %39, %cst_108 {dimension_numbers = #tpu.dot_dimension_numbers<[1], [0], [0], [1], [0, 0, 1, 1], [], []>} : vector<2x32xbf16>, vector<32x128xbf16>, vector<2x128xf32> -> vector<2x128xf32>
    %376 = arith.addf %373, %375 : vector<2x128xf32>
    %c2_109 = arith.constant 2 : index
    %c0_110 = arith.constant 0 : index
    %c128_111 = arith.constant 128 : index
    %377 = vector.load %arg11[%c2_109, %c0_110, %c128_111] : memref<8x2x256xf32, #tpu.memory_space<vmem>>, vector<1x2x128xf32>
    %378 = vector.shape_cast %377 : vector<1x2x128xf32> to vector<2x128xf32>
    %379 = arith.truncf %368 : vector<2x32xf32> to vector<2x32xbf16>
    %cst_112 = arith.constant dense<0.000000e+00> : vector<2x128xf32>
    %380 = tpu.matmul %379, %40, %cst_112 {dimension_numbers = #tpu.dot_dimension_numbers<[1], [0], [0], [1], [0, 0, 1, 1], [], []>} : vector<2x32xbf16>, vector<32x128xbf16>, vector<2x128xf32> -> vector<2x128xf32>
    %381 = arith.addf %378, %380 : vector<2x128xf32>
    %382 = arith.negf %376 : vector<2x128xf32>
    %383 = math.exp %382 : vector<2x128xf32>
    %cst_113 = arith.constant 1.000000e+00 : f32
    %384 = vector.broadcast %cst_113 : f32 to vector<2x128xf32>
    %385 = arith.addf %384, %383 : vector<2x128xf32>
    %386 = arith.divf %384, %385 : vector<2x128xf32>
    %387 = math.tanh %376 : vector<2x128xf32>
    %388 = vector.extract_strided_slice %386 {offsets = [0, 0], sizes = [2, 32], strides = [1, 1]} : vector<2x128xf32> to vector<2x32xf32>
    %389 = vector.extract_strided_slice %386 {offsets = [0, 32], sizes = [2, 32], strides = [1, 1]} : vector<2x128xf32> to vector<2x32xf32>
    %390 = vector.extract_strided_slice %386 {offsets = [0, 96], sizes = [2, 32], strides = [1, 1]} : vector<2x128xf32> to vector<2x32xf32>
    %391 = vector.extract_strided_slice %387 {offsets = [0, 64], sizes = [2, 32], strides = [1, 1]} : vector<2x128xf32> to vector<2x32xf32>
    %392 = arith.mulf %389, %365 : vector<2x32xf32>
    %393 = arith.mulf %388, %391 : vector<2x32xf32>
    %394 = arith.addf %392, %393 : vector<2x32xf32>
    %395 = math.tanh %394 : vector<2x32xf32>
    %396 = arith.mulf %390, %395 : vector<2x32xf32>
    %397 = arith.negf %381 : vector<2x128xf32>
    %398 = math.exp %397 : vector<2x128xf32>
    %cst_114 = arith.constant 1.000000e+00 : f32
    %399 = vector.broadcast %cst_114 : f32 to vector<2x128xf32>
    %400 = arith.addf %399, %398 : vector<2x128xf32>
    %401 = arith.divf %399, %400 : vector<2x128xf32>
    %402 = math.tanh %381 : vector<2x128xf32>
    %403 = vector.extract_strided_slice %401 {offsets = [0, 0], sizes = [2, 32], strides = [1, 1]} : vector<2x128xf32> to vector<2x32xf32>
    %404 = vector.extract_strided_slice %401 {offsets = [0, 32], sizes = [2, 32], strides = [1, 1]} : vector<2x128xf32> to vector<2x32xf32>
    %405 = vector.extract_strided_slice %401 {offsets = [0, 96], sizes = [2, 32], strides = [1, 1]} : vector<2x128xf32> to vector<2x32xf32>
    %406 = vector.extract_strided_slice %402 {offsets = [0, 64], sizes = [2, 32], strides = [1, 1]} : vector<2x128xf32> to vector<2x32xf32>
    %407 = arith.mulf %404, %371 : vector<2x32xf32>
    %408 = arith.mulf %403, %406 : vector<2x32xf32>
    %409 = arith.addf %407, %408 : vector<2x32xf32>
    %410 = math.tanh %409 : vector<2x32xf32>
    %411 = arith.mulf %405, %410 : vector<2x32xf32>
    %c5_i32_115 = arith.constant 5 : i32
    %412 = vector.broadcast %c5_i32_115 : i32 to vector<2x1xi32>
    %413 = arith.cmpi sgt, %0, %412 : vector<2x1xi32>
    %c2_i32_116 = arith.constant 2 : i32
    %414 = vector.broadcast %c2_i32_116 : i32 to vector<2x1xi32>
    %415 = arith.cmpi sgt, %0, %414 : vector<2x1xi32>
    %cst_117 = arith.constant 0.000000e+00 : f32
    %416 = vector.shape_cast %413 : vector<2x1xi1> to vector<2x1xi1>
    %417 = vector.broadcast %416 : vector<2x1xi1> to vector<2x32xi1>
    %418 = vector.broadcast %cst_117 : f32 to vector<2x32xf32>
    %419 = arith.select %417, %396, %418 : vector<2x32xi1>, vector<2x32xf32>
    %c10_118 = arith.constant 10 : index
    %c0_119 = arith.constant 0 : index
    %420 = vector.load %arg12[%c10_118, %c0_119] : memref<16x64xf32, #tpu.memory_space<vmem>>, vector<2x32xf32>
    tpu.vector_store %arg12[%c10_118, %c0_119], %419 {strides = array<i32>} : memref<16x64xf32, #tpu.memory_space<vmem>>, vector<2x32xf32>,
    %cst_120 = arith.constant 0.000000e+00 : f32
    %421 = vector.shape_cast %415 : vector<2x1xi1> to vector<2x1xi1>
    %422 = vector.broadcast %421 : vector<2x1xi1> to vector<2x32xi1>
    %423 = vector.broadcast %cst_120 : f32 to vector<2x32xf32>
    %424 = arith.select %422, %411, %423 : vector<2x32xi1>, vector<2x32xf32>
    %c4_121 = arith.constant 4 : index
    %c32_122 = arith.constant 32 : index
    %425 = vector.load %arg12[%c4_121, %c32_122] : memref<16x64xf32, #tpu.memory_space<vmem>>, vector<2x32xf32>
    tpu.vector_store %arg12[%c4_121, %c32_122], %424 {strides = array<i32>} : memref<16x64xf32, #tpu.memory_space<vmem>>, vector<2x32xf32>,
    %426 = vector.shape_cast %413 : vector<2x1xi1> to vector<2x1xi1>
    %427 = vector.broadcast %426 : vector<2x1xi1> to vector<2x32xi1>
    %428 = arith.select %427, %396, %362 : vector<2x32xi1>, vector<2x32xf32>
    %429 = vector.shape_cast %413 : vector<2x1xi1> to vector<2x1xi1>
    %430 = vector.broadcast %429 : vector<2x1xi1> to vector<2x32xi1>
    %431 = arith.select %430, %394, %365 : vector<2x32xi1>, vector<2x32xf32>
    %432 = vector.shape_cast %415 : vector<2x1xi1> to vector<2x1xi1>
    %433 = vector.broadcast %432 : vector<2x1xi1> to vector<2x32xi1>
    %434 = arith.select %433, %411, %368 : vector<2x32xi1>, vector<2x32xf32>
    %435 = vector.shape_cast %415 : vector<2x1xi1> to vector<2x1xi1>
    %436 = vector.broadcast %435 : vector<2x1xi1> to vector<2x32xi1>
    %437 = arith.select %436, %409, %371 : vector<2x32xi1>, vector<2x32xf32>
    %c6_123 = arith.constant 6 : index
    %c0_124 = arith.constant 0 : index
    %c0_125 = arith.constant 0 : index
    %438 = vector.load %arg11[%c6_123, %c0_124, %c0_125] : memref<8x2x256xf32, #tpu.memory_space<vmem>>, vector<1x2x128xf32>
    %439 = vector.shape_cast %438 : vector<1x2x128xf32> to vector<2x128xf32>
    %440 = arith.truncf %428 : vector<2x32xf32> to vector<2x32xbf16>
    %cst_126 = arith.constant dense<0.000000e+00> : vector<2x128xf32>
    %441 = tpu.matmul %440, %39, %cst_126 {dimension_numbers = #tpu.dot_dimension_numbers<[1], [0], [0], [1], [0, 0, 1, 1], [], []>} : vector<2x32xbf16>, vector<32x128xbf16>, vector<2x128xf32> -> vector<2x128xf32>
    %442 = arith.addf %439, %441 : vector<2x128xf32>
    %c1_127 = arith.constant 1 : index
    %c0_128 = arith.constant 0 : index
    %c128_129 = arith.constant 128 : index
    %443 = vector.load %arg11[%c1_127, %c0_128, %c128_129] : memref<8x2x256xf32, #tpu.memory_space<vmem>>, vector<1x2x128xf32>
    %444 = vector.shape_cast %443 : vector<1x2x128xf32> to vector<2x128xf32>
    %445 = arith.truncf %434 : vector<2x32xf32> to vector<2x32xbf16>
    %cst_130 = arith.constant dense<0.000000e+00> : vector<2x128xf32>
    %446 = tpu.matmul %445, %40, %cst_130 {dimension_numbers = #tpu.dot_dimension_numbers<[1], [0], [0], [1], [0, 0, 1, 1], [], []>} : vector<2x32xbf16>, vector<32x128xbf16>, vector<2x128xf32> -> vector<2x128xf32>
    %447 = arith.addf %444, %446 : vector<2x128xf32>
    %448 = arith.negf %442 : vector<2x128xf32>
    %449 = math.exp %448 : vector<2x128xf32>
    %cst_131 = arith.constant 1.000000e+00 : f32
    %450 = vector.broadcast %cst_131 : f32 to vector<2x128xf32>
    %451 = arith.addf %450, %449 : vector<2x128xf32>
    %452 = arith.divf %450, %451 : vector<2x128xf32>
    %453 = math.tanh %442 : vector<2x128xf32>
    %454 = vector.extract_strided_slice %452 {offsets = [0, 0], sizes = [2, 32], strides = [1, 1]} : vector<2x128xf32> to vector<2x32xf32>
    %455 = vector.extract_strided_slice %452 {offsets = [0, 32], sizes = [2, 32], strides = [1, 1]} : vector<2x128xf32> to vector<2x32xf32>
    %456 = vector.extract_strided_slice %452 {offsets = [0, 96], sizes = [2, 32], strides = [1, 1]} : vector<2x128xf32> to vector<2x32xf32>
    %457 = vector.extract_strided_slice %453 {offsets = [0, 64], sizes = [2, 32], strides = [1, 1]} : vector<2x128xf32> to vector<2x32xf32>
    %458 = arith.mulf %455, %431 : vector<2x32xf32>
    %459 = arith.mulf %454, %457 : vector<2x32xf32>
    %460 = arith.addf %458, %459 : vector<2x32xf32>
    %461 = math.tanh %460 : vector<2x32xf32>
    %462 = arith.mulf %456, %461 : vector<2x32xf32>
    %463 = arith.negf %447 : vector<2x128xf32>
    %464 = math.exp %463 : vector<2x128xf32>
    %cst_132 = arith.constant 1.000000e+00 : f32
    %465 = vector.broadcast %cst_132 : f32 to vector<2x128xf32>
    %466 = arith.addf %465, %464 : vector<2x128xf32>
    %467 = arith.divf %465, %466 : vector<2x128xf32>
    %468 = math.tanh %447 : vector<2x128xf32>
    %469 = vector.extract_strided_slice %467 {offsets = [0, 0], sizes = [2, 32], strides = [1, 1]} : vector<2x128xf32> to vector<2x32xf32>
    %470 = vector.extract_strided_slice %467 {offsets = [0, 32], sizes = [2, 32], strides = [1, 1]} : vector<2x128xf32> to vector<2x32xf32>
    %471 = vector.extract_strided_slice %467 {offsets = [0, 96], sizes = [2, 32], strides = [1, 1]} : vector<2x128xf32> to vector<2x32xf32>
    %472 = vector.extract_strided_slice %468 {offsets = [0, 64], sizes = [2, 32], strides = [1, 1]} : vector<2x128xf32> to vector<2x32xf32>
    %473 = arith.mulf %470, %437 : vector<2x32xf32>
    %474 = arith.mulf %469, %472 : vector<2x32xf32>
    %475 = arith.addf %473, %474 : vector<2x32xf32>
    %476 = math.tanh %475 : vector<2x32xf32>
    %477 = arith.mulf %471, %476 : vector<2x32xf32>
    %c6_i32_133 = arith.constant 6 : i32
    %478 = vector.broadcast %c6_i32_133 : i32 to vector<2x1xi32>
    %479 = arith.cmpi sgt, %0, %478 : vector<2x1xi32>
    %c1_i32_134 = arith.constant 1 : i32
    %480 = vector.broadcast %c1_i32_134 : i32 to vector<2x1xi32>
    %481 = arith.cmpi sgt, %0, %480 : vector<2x1xi32>
    %cst_135 = arith.constant 0.000000e+00 : f32
    %482 = vector.shape_cast %479 : vector<2x1xi1> to vector<2x1xi1>
    %483 = vector.broadcast %482 : vector<2x1xi1> to vector<2x32xi1>
    %484 = vector.broadcast %cst_135 : f32 to vector<2x32xf32>
    %485 = arith.select %483, %462, %484 : vector<2x32xi1>, vector<2x32xf32>
    %c12_136 = arith.constant 12 : index
    %c0_137 = arith.constant 0 : index
    %486 = vector.load %arg12[%c12_136, %c0_137] : memref<16x64xf32, #tpu.memory_space<vmem>>, vector<2x32xf32>
    tpu.vector_store %arg12[%c12_136, %c0_137], %485 {strides = array<i32>} : memref<16x64xf32, #tpu.memory_space<vmem>>, vector<2x32xf32>,
    %cst_138 = arith.constant 0.000000e+00 : f32
    %487 = vector.shape_cast %481 : vector<2x1xi1> to vector<2x1xi1>
    %488 = vector.broadcast %487 : vector<2x1xi1> to vector<2x32xi1>
    %489 = vector.broadcast %cst_138 : f32 to vector<2x32xf32>
    %490 = arith.select %488, %477, %489 : vector<2x32xi1>, vector<2x32xf32>
    %c2_139 = arith.constant 2 : index
    %c32_140 = arith.constant 32 : index
    %491 = vector.load %arg12[%c2_139, %c32_140] : memref<16x64xf32, #tpu.memory_space<vmem>>, vector<2x32xf32>
    tpu.vector_store %arg12[%c2_139, %c32_140], %490 {strides = array<i32>} : memref<16x64xf32, #tpu.memory_space<vmem>>, vector<2x32xf32>,
    %492 = vector.shape_cast %479 : vector<2x1xi1> to vector<2x1xi1>
    %493 = vector.broadcast %492 : vector<2x1xi1> to vector<2x32xi1>
    %494 = arith.select %493, %462, %428 : vector<2x32xi1>, vector<2x32xf32>
    %495 = vector.shape_cast %479 : vector<2x1xi1> to vector<2x1xi1>
    %496 = vector.broadcast %495 : vector<2x1xi1> to vector<2x32xi1>
    %497 = arith.select %496, %460, %431 : vector<2x32xi1>, vector<2x32xf32>
    %498 = vector.shape_cast %481 : vector<2x1xi1> to vector<2x1xi1>
    %499 = vector.broadcast %498 : vector<2x1xi1> to vector<2x32xi1>
    %500 = arith.select %499, %477, %434 : vector<2x32xi1>, vector<2x32xf32>
    %501 = vector.shape_cast %481 : vector<2x1xi1> to vector<2x1xi1>
    %502 = vector.broadcast %501 : vector<2x1xi1> to vector<2x32xi1>
    %503 = arith.select %502, %475, %437 : vector<2x32xi1>, vector<2x32xf32>
    %c7_141 = arith.constant 7 : index
    %c0_142 = arith.constant 0 : index
    %c0_143 = arith.constant 0 : index
    %504 = vector.load %arg11[%c7_141, %c0_142, %c0_143] : memref<8x2x256xf32, #tpu.memory_space<vmem>>, vector<1x2x128xf32>
    %505 = vector.shape_cast %504 : vector<1x2x128xf32> to vector<2x128xf32>
    %506 = arith.truncf %494 : vector<2x32xf32> to vector<2x32xbf16>
    %cst_144 = arith.constant dense<0.000000e+00> : vector<2x128xf32>
    %507 = tpu.matmul %506, %39, %cst_144 {dimension_numbers = #tpu.dot_dimension_numbers<[1], [0], [0], [1], [0, 0, 1, 1], [], []>} : vector<2x32xbf16>, vector<32x128xbf16>, vector<2x128xf32> -> vector<2x128xf32>
    %508 = arith.addf %505, %507 : vector<2x128xf32>
    %c0_145 = arith.constant 0 : index
    %c0_146 = arith.constant 0 : index
    %c128_147 = arith.constant 128 : index
    %509 = vector.load %arg11[%c0_145, %c0_146, %c128_147] : memref<8x2x256xf32, #tpu.memory_space<vmem>>, vector<1x2x128xf32>
    %510 = vector.shape_cast %509 : vector<1x2x128xf32> to vector<2x128xf32>
    %511 = arith.truncf %500 : vector<2x32xf32> to vector<2x32xbf16>
    %cst_148 = arith.constant dense<0.000000e+00> : vector<2x128xf32>
    %512 = tpu.matmul %511, %40, %cst_148 {dimension_numbers = #tpu.dot_dimension_numbers<[1], [0], [0], [1], [0, 0, 1, 1], [], []>} : vector<2x32xbf16>, vector<32x128xbf16>, vector<2x128xf32> -> vector<2x128xf32>
    %513 = arith.addf %510, %512 : vector<2x128xf32>
    %514 = arith.negf %508 : vector<2x128xf32>
    %515 = math.exp %514 : vector<2x128xf32>
    %cst_149 = arith.constant 1.000000e+00 : f32
    %516 = vector.broadcast %cst_149 : f32 to vector<2x128xf32>
    %517 = arith.addf %516, %515 : vector<2x128xf32>
    %518 = arith.divf %516, %517 : vector<2x128xf32>
    %519 = math.tanh %508 : vector<2x128xf32>
    %520 = vector.extract_strided_slice %518 {offsets = [0, 0], sizes = [2, 32], strides = [1, 1]} : vector<2x128xf32> to vector<2x32xf32>
    %521 = vector.extract_strided_slice %518 {offsets = [0, 32], sizes = [2, 32], strides = [1, 1]} : vector<2x128xf32> to vector<2x32xf32>
    %522 = vector.extract_strided_slice %518 {offsets = [0, 96], sizes = [2, 32], strides = [1, 1]} : vector<2x128xf32> to vector<2x32xf32>
    %523 = vector.extract_strided_slice %519 {offsets = [0, 64], sizes = [2, 32], strides = [1, 1]} : vector<2x128xf32> to vector<2x32xf32>
    %524 = arith.mulf %521, %497 : vector<2x32xf32>
    %525 = arith.mulf %520, %523 : vector<2x32xf32>
    %526 = arith.addf %524, %525 : vector<2x32xf32>
    %527 = math.tanh %526 : vector<2x32xf32>
    %528 = arith.mulf %522, %527 : vector<2x32xf32>
    %529 = arith.negf %513 : vector<2x128xf32>
    %530 = math.exp %529 : vector<2x128xf32>
    %cst_150 = arith.constant 1.000000e+00 : f32
    %531 = vector.broadcast %cst_150 : f32 to vector<2x128xf32>
    %532 = arith.addf %531, %530 : vector<2x128xf32>
    %533 = arith.divf %531, %532 : vector<2x128xf32>
    %534 = math.tanh %513 : vector<2x128xf32>
    %535 = vector.extract_strided_slice %533 {offsets = [0, 0], sizes = [2, 32], strides = [1, 1]} : vector<2x128xf32> to vector<2x32xf32>
    %536 = vector.extract_strided_slice %533 {offsets = [0, 32], sizes = [2, 32], strides = [1, 1]} : vector<2x128xf32> to vector<2x32xf32>
    %537 = vector.extract_strided_slice %533 {offsets = [0, 96], sizes = [2, 32], strides = [1, 1]} : vector<2x128xf32> to vector<2x32xf32>
    %538 = vector.extract_strided_slice %534 {offsets = [0, 64], sizes = [2, 32], strides = [1, 1]} : vector<2x128xf32> to vector<2x32xf32>
    %539 = arith.mulf %536, %503 : vector<2x32xf32>
    %540 = arith.mulf %535, %538 : vector<2x32xf32>
    %541 = arith.addf %539, %540 : vector<2x32xf32>
    %542 = math.tanh %541 : vector<2x32xf32>
    %543 = arith.mulf %537, %542 : vector<2x32xf32>
    %c7_i32_151 = arith.constant 7 : i32
    %544 = vector.broadcast %c7_i32_151 : i32 to vector<2x1xi32>
    %545 = arith.cmpi sgt, %0, %544 : vector<2x1xi32>
    %c0_i32_152 = arith.constant 0 : i32
    %546 = vector.broadcast %c0_i32_152 : i32 to vector<2x1xi32>
    %547 = arith.cmpi sgt, %0, %546 : vector<2x1xi32>
    %cst_153 = arith.constant 0.000000e+00 : f32
    %548 = vector.shape_cast %545 : vector<2x1xi1> to vector<2x1xi1>
    %549 = vector.broadcast %548 : vector<2x1xi1> to vector<2x32xi1>
    %550 = vector.broadcast %cst_153 : f32 to vector<2x32xf32>
    %551 = arith.select %549, %528, %550 : vector<2x32xi1>, vector<2x32xf32>
    %c14_154 = arith.constant 14 : index
    %c0_155 = arith.constant 0 : index
    %552 = vector.load %arg12[%c14_154, %c0_155] : memref<16x64xf32, #tpu.memory_space<vmem>>, vector<2x32xf32>
    tpu.vector_store %arg12[%c14_154, %c0_155], %551 {strides = array<i32>} : memref<16x64xf32, #tpu.memory_space<vmem>>, vector<2x32xf32>,
    %cst_156 = arith.constant 0.000000e+00 : f32
    %553 = vector.shape_cast %547 : vector<2x1xi1> to vector<2x1xi1>
    %554 = vector.broadcast %553 : vector<2x1xi1> to vector<2x32xi1>
    %555 = vector.broadcast %cst_156 : f32 to vector<2x32xf32>
    %556 = arith.select %554, %543, %555 : vector<2x32xi1>, vector<2x32xf32>
    %c0_157 = arith.constant 0 : index
    %c32_158 = arith.constant 32 : index
    %557 = vector.load %arg12[%c0_157, %c32_158] : memref<16x64xf32, #tpu.memory_space<vmem>>, vector<2x32xf32>
    tpu.vector_store %arg12[%c0_157, %c32_158], %556 {strides = array<i32>} : memref<16x64xf32, #tpu.memory_space<vmem>>, vector<2x32xf32>,
    %c0_159 = arith.constant 0 : index
    %c0_160 = arith.constant 0 : index
    %558 = vector.load %arg12[%c0_159, %c0_160] : memref<16x64xf32, #tpu.memory_space<vmem>>, vector<16x64xf32>
    %559 = arith.truncf %558 : vector<16x64xf32> to vector<16x64xbf16>
    %c0_161 = arith.constant 0 : index
    %c0_162 = arith.constant 0 : index
    %560 = vector.load %arg7[%c0_161, %c0_162] : memref<64x64xbf16, #tpu.memory_space<vmem>>, vector<64x64xbf16>
    %cst_163 = arith.constant dense<0.000000e+00> : vector<16x64xf32>
    %561 = tpu.matmul %559, %560, %cst_163 {dimension_numbers = #tpu.dot_dimension_numbers<[1], [0], [0], [1], [0, 0, 1, 1], [], []>} : vector<16x64xbf16>, vector<64x64xbf16>, vector<16x64xf32> -> vector<16x64xf32>
    %562 = math.tanh %561 : vector<16x64xf32>
    %563 = arith.truncf %562 : vector<16x64xf32> to vector<16x64xbf16>
    %c0_164 = arith.constant 0 : index
    %c0_165 = arith.constant 0 : index
    %564 = vector.load %arg8[%c0_164, %c0_165] : memref<64x4xbf16, #tpu.memory_space<vmem>>, vector<64x4xbf16>
    %cst_166 = arith.constant dense<0.000000e+00> : vector<16x4xf32>
    %565 = tpu.matmul %563, %564, %cst_166 {dimension_numbers = #tpu.dot_dimension_numbers<[1], [0], [0], [1], [0, 0, 1, 1], [], []>} : vector<16x64xbf16>, vector<64x4xbf16>, vector<16x4xf32> -> vector<16x4xf32>
    %566 = tpu.iota {dimensions = array<i32: 0>} : vector<16x1xi32>
    %c1_i32_167 = arith.constant 1 : i32
    %567 = vector.broadcast %c1_i32_167 : i32 to vector<16x1xi32>
    %568 = arith.shrsi %566, %567 : vector<16x1xi32>
    %c1_i32_168 = arith.constant 1 : i32
    %569 = vector.broadcast %c1_i32_168 : i32 to vector<16x1xi32>
    %570 = arith.andi %566, %569 : vector<16x1xi32>
    %c0_i32_169 = arith.constant 0 : i32
    %571 = vector.broadcast %c0_i32_169 : i32 to vector<16x1xi32>
    %572 = arith.cmpi eq, %570, %571 : vector<16x1xi32>
    %573 = vector.extract_strided_slice %0 {offsets = [0, 0], sizes = [1, 1], strides = [1, 1]} : vector<2x1xi32> to vector<1x1xi32>
    %c0_i32_170 = arith.constant 0 : i32
    %574 = vector.shape_cast %573 : vector<1x1xi32> to vector<1x1xi32>
    %575 = vector.broadcast %574 : vector<1x1xi32> to vector<16x1xi32>
    %576 = vector.broadcast %c0_i32_170 : i32 to vector<16x1xi32>
    %577 = arith.select %572, %575, %576 : vector<16x1xi1>, vector<16x1xi32>
    %c1_i32_171 = arith.constant 1 : i32
    %578 = vector.broadcast %c1_i32_171 : i32 to vector<16x1xi32>
    %579 = arith.cmpi eq, %570, %578 : vector<16x1xi32>
    %580 = vector.extract_strided_slice %0 {offsets = [1, 0], sizes = [1, 1], strides = [1, 1]} : vector<2x1xi32> to vector<1x1xi32>
    %581 = vector.shape_cast %580 : vector<1x1xi32> to vector<1x1xi32>
    %582 = vector.broadcast %581 : vector<1x1xi32> to vector<16x1xi32>
    %583 = arith.select %579, %582, %577 : vector<16x1xi1>, vector<16x1xi32>
    %584 = arith.cmpi slt, %568, %583 : vector<16x1xi32>
    %cst_172 = arith.constant -1.000000e+30 : f32
    %585 = vector.shape_cast %584 : vector<16x1xi1> to vector<16x1xi1>
    %586 = vector.broadcast %585 : vector<16x1xi1> to vector<16x4xi1>
    %587 = vector.broadcast %cst_172 : f32 to vector<16x4xf32>
    %588 = arith.select %586, %565, %587 : vector<16x4xi1>, vector<16x4xf32>
    %cst_173 = arith.constant dense<0xFF800000> : vector<4xf32>
    %589 = vector.multi_reduction <maximumf>, %588, %cst_173 [0] : vector<16x4xf32> to vector<4xf32>
    %590 = vector.shape_cast %589 : vector<4xf32> to vector<1x4xf32>
    %591 = vector.broadcast %590 : vector<1x4xf32> to vector<16x4xf32>
    %592 = arith.subf %588, %591 : vector<16x4xf32>
    %593 = math.exp %592 : vector<16x4xf32>
    %cst_174 = arith.constant 0.000000e+00 : f32
    %594 = vector.shape_cast %584 : vector<16x1xi1> to vector<16x1xi1>
    %595 = vector.broadcast %594 : vector<16x1xi1> to vector<16x4xi1>
    %596 = vector.broadcast %cst_174 : f32 to vector<16x4xf32>
    %597 = arith.select %595, %593, %596 : vector<16x4xi1>, vector<16x4xf32>
    %cst_175 = arith.constant 0.000000e+00 : f32
    %598 = vector.broadcast %cst_175 : f32 to vector<16x4xf32>
    %c0_i32_176 = arith.constant 0 : i32
    %599 = vector.broadcast %c0_i32_176 : i32 to vector<16x1xi32>
    %600 = arith.cmpi eq, %570, %599 : vector<16x1xi32>
    %cst_177 = arith.constant 0.000000e+00 : f32
    %601 = vector.shape_cast %600 : vector<16x1xi1> to vector<16x1xi1>
    %602 = vector.broadcast %601 : vector<16x1xi1> to vector<16x4xi1>
    %603 = vector.broadcast %cst_177 : f32 to vector<16x4xf32>
    %604 = arith.select %602, %597, %603 : vector<16x4xi1>, vector<16x4xf32>
    %cst_178 = arith.constant dense<0.000000e+00> : vector<4xf32>
    %605 = vector.multi_reduction <add>, %604, %cst_178 [0] : vector<16x4xf32> to vector<4xf32>
    %606 = vector.shape_cast %605 : vector<4xf32> to vector<1x4xf32>
    %607 = tpu.reciprocal %606 {approx = true} : vector<1x4xf32> -> vector<1x4xf32>
    %608 = vector.broadcast %607 : vector<1x4xf32> to vector<16x4xf32>
    %609 = arith.mulf %604, %608 : vector<16x4xf32>
    %cst_179 = arith.constant dense<0.000000e+00> : vector<4x64xf32>
    %610 = tpu.matmul %609, %558, %cst_179 {dimension_numbers = #tpu.dot_dimension_numbers<[0], [0], [1], [1], [0, 1, 1, 1], [], []>} : vector<16x4xf32>, vector<16x64xf32>, vector<4x64xf32> -> vector<4x64xf32>
    %c0_180 = arith.constant 0 : index
    %c0_181 = arith.constant 0 : index
    %c0_182 = arith.constant 0 : index
    %611 = vector.load %arg9[%c0_180, %c0_181, %c0_182] : memref<2x4x64xf32, #tpu.memory_space<vmem>>, vector<1x4x64xf32>
    %612 = vector.shape_cast %611 : vector<1x4x64xf32> to vector<4x64xf32>
    %613 = vector.shape_cast %610 : vector<4x64xf32> to vector<1x4x64xf32>
    tpu.vector_store %arg9[%c0_180, %c0_181, %c0_182], %613 {strides = array<i32>} : memref<2x4x64xf32, #tpu.memory_space<vmem>>, vector<1x4x64xf32>,
    %614 = arith.addf %598, %609 : vector<16x4xf32>
    %c1_i32_183 = arith.constant 1 : i32
    %615 = vector.broadcast %c1_i32_183 : i32 to vector<16x1xi32>
    %616 = arith.cmpi eq, %570, %615 : vector<16x1xi32>
    %cst_184 = arith.constant 0.000000e+00 : f32
    %617 = vector.shape_cast %616 : vector<16x1xi1> to vector<16x1xi1>
    %618 = vector.broadcast %617 : vector<16x1xi1> to vector<16x4xi1>
    %619 = vector.broadcast %cst_184 : f32 to vector<16x4xf32>
    %620 = arith.select %618, %597, %619 : vector<16x4xi1>, vector<16x4xf32>
    %cst_185 = arith.constant dense<0.000000e+00> : vector<4xf32>
    %621 = vector.multi_reduction <add>, %620, %cst_185 [0] : vector<16x4xf32> to vector<4xf32>
    %622 = vector.shape_cast %621 : vector<4xf32> to vector<1x4xf32>
    %623 = tpu.reciprocal %622 {approx = true} : vector<1x4xf32> -> vector<1x4xf32>
    %624 = vector.broadcast %623 : vector<1x4xf32> to vector<16x4xf32>
    %625 = arith.mulf %620, %624 : vector<16x4xf32>
    %cst_186 = arith.constant dense<0.000000e+00> : vector<4x64xf32>
    %626 = tpu.matmul %625, %558, %cst_186 {dimension_numbers = #tpu.dot_dimension_numbers<[0], [0], [1], [1], [0, 1, 1, 1], [], []>} : vector<16x4xf32>, vector<16x64xf32>, vector<4x64xf32> -> vector<4x64xf32>
    %c1_187 = arith.constant 1 : index
    %c0_188 = arith.constant 0 : index
    %c0_189 = arith.constant 0 : index
    %627 = vector.load %arg9[%c1_187, %c0_188, %c0_189] : memref<2x4x64xf32, #tpu.memory_space<vmem>>, vector<1x4x64xf32>
    %628 = vector.shape_cast %627 : vector<1x4x64xf32> to vector<4x64xf32>
    %629 = vector.shape_cast %626 : vector<4x64xf32> to vector<1x4x64xf32>
    tpu.vector_store %arg9[%c1_187, %c0_188, %c0_189], %629 {strides = array<i32>} : memref<2x4x64xf32, #tpu.memory_space<vmem>>, vector<1x4x64xf32>,
    %630 = arith.addf %614, %625 : vector<16x4xf32>
    %c0_190 = arith.constant 0 : index
    %c0_191 = arith.constant 0 : index
    %631 = vector.load %arg10[%c0_190, %c0_191] : memref<16x4xf32, #tpu.memory_space<vmem>>, vector<16x4xf32>
    tpu.vector_store %arg10[%c0_190, %c0_191], %630 {strides = array<i32>} : memref<16x4xf32, #tpu.memory_space<vmem>>, vector<16x4xf32>,
    return
  }
  func.func @transform_0(%arg0: i32) -> (i32, i32) {
    %c0_i32 = arith.constant 0 : i32
    %c0_i32_0 = arith.constant 0 : i32
    %c0_i32_1 = arith.constant 0 : i32
    return %c0_i32, %c0_i32_0 : i32, i32
  }
  func.func @transform_1(%arg0: i32) -> (i32, i32) {
    %c0_i32 = arith.constant 0 : i32
    %c0_i32_0 = arith.constant 0 : i32
    %c0_i32_1 = arith.constant 0 : i32
    return %c0_i32, %c0_i32_0 : i32, i32
  }
  func.func @transform_2(%arg0: i32) -> (i32, i32) {
    %c0_i32 = arith.constant 0 : i32
    %c0_i32_0 = arith.constant 0 : i32
    %c0_i32_1 = arith.constant 0 : i32
    return %c0_i32, %c0_i32_0 : i32, i32
  }
  func.func @transform_3(%arg0: i32) -> (i32, i32) {
    %c0_i32 = arith.constant 0 : i32
    %c0_i32_0 = arith.constant 0 : i32
    %c0_i32_1 = arith.constant 0 : i32
    return %c0_i32, %c0_i32_0 : i32, i32
  }
  func.func @transform_4(%arg0: i32) -> (i32, i32) {
    %c0_i32 = arith.constant 0 : i32
    %c0_i32_0 = arith.constant 0 : i32
    %c0_i32_1 = arith.constant 0 : i32
    return %c0_i32, %c0_i32_0 : i32, i32
  }
  func.func @transform_5(%arg0: i32) -> (i32, i32) {
    %c0_i32 = arith.constant 0 : i32
    %c0_i32_0 = arith.constant 0 : i32
    %c0_i32_1 = arith.constant 0 : i32
    return %c0_i32, %c0_i32_0 : i32, i32
  }
  func.func @transform_6(%arg0: i32) -> (i32, i32) {
    %c0_i32 = arith.constant 0 : i32
    %c0_i32_0 = arith.constant 0 : i32
    %c0_i32_1 = arith.constant 0 : i32
    return %c0_i32, %c0_i32_0 : i32, i32
  }
  func.func @transform_7(%arg0: i32) -> (i32, i32) {
    %c0_i32 = arith.constant 0 : i32
    %c0_i32_0 = arith.constant 0 : i32
    %c0_i32_1 = arith.constant 0 : i32
    return %c0_i32, %c0_i32_0 : i32, i32
  }
  func.func @transform_8(%arg0: i32) -> (i32, i32, i32) {
    %c0_i32 = arith.constant 0 : i32
    %c0_i32_0 = arith.constant 0 : i32
    %c0_i32_1 = arith.constant 0 : i32
    %c0_i32_2 = arith.constant 0 : i32
    return %c0_i32, %c0_i32_0, %c0_i32_1 : i32, i32, i32
  }
  func.func @transform_9(%arg0: i32) -> (i32, i32) {
    %c0_i32 = arith.constant 0 : i32
    %c0_i32_0 = arith.constant 0 : i32
    %c0_i32_1 = arith.constant 0 : i32
    return %c0_i32, %c0_i32_0 : i32, i32
  }
}

</mosaic_0001>

<bundles_post_ra>
// kernel: lstm_multi_att_forward.1
= control target key start
LH: loop header
LB: loop body
LE: loop exit
PB: predicated region body
PF: predicated region fallthrough
CT: control target
= control target key end

     0   :  { %vm65_vm0 = vcmask 130048   ;;  %v2915_v2 = vmov 0   ;;  %v2916_v4 = vmov 0.0   ;;  %vm2917_vm1 = vmmov 0   ;;  %s3707_s0 = inlined_call_operand.vmem [shape: s32[2,1], index: 0, kind: input, shape index: {}]   ;;  %s3708_s1 = inlined_call_operand.vmem [shape: bf16[16,16], index: 1, kind: input, shape index: {}]   ;;  %s3709_s2 = inlined_call_operand.vmem [shape: bf16[16,256], index: 2, kind: input, shape index: {}]   ;;  %s3710_s3 = inlined_call_operand.vmem [shape: bf16[32,128], index: 3, kind: input, shape index: {}]   ;;  %s3711_s4 = inlined_call_operand.vmem [shape: bf16[32,128], index: 4, kind: input, shape index: {}]   ;;  %s3712_s5 = inlined_call_operand.vmem [shape: f32[1,256], index: 5, kind: input, shape index: {}]   ;;  %s3713_s6 = inlined_call_operand.vmem [shape: bf16[64,64], index: 6, kind: input, shape index: {}]   ;;  %s3714_s7 = inlined_call_operand.vmem [shape: bf16[64,4], index: 7, kind: input, shape index: {}]   ;;  %s3715_s8 = inlined_call_operand.hbm [shape: f32[2,4,64], index: 8, kind: output, shape index: {0}]   ;;  %s3716_s9 = inlined_call_operand.vmem [shape: f32[16,4], index: 9, kind: output, shape index: {1}]  }
   0x1   :  { %v2732_v0 = vld [vmem:[%s3709_s2 + $0x4] ss:$8 sps:$4 sm:$0xff]   ;;  %v2734_v1 = vld [vmem:[%s3709_s2] ss:$8 sps:$4 sm:$0xff]   ;;  %101 = vmatprep.mubr.bf16.mxu0 %v2915_v2  ;;  %2730 = vset.pattern.permute.xlu1 %v2915_v2 }
   0x2   :  { %83 = vmatprep.subr.bf16.mxu0 %v2732_v0  ;;  %v2735_v3 = vld [vmem:[%s3708_s1] sm:$0xff]   ;;  %2731 = vset.pattern.permute.xlu0 %v2915_v2  ;;  %v2990_v5 = vld [vmem:[%s3710_s3 + $0x8] sm:$0xff]  }
   0x3   :  { %84 = vmatpush1.bf16.msra.mxu0 %v2734_v1  ;;  %2555 = vmatprep.subr.bf16.mxu1 %v2916_v4  ;;  %v2996_v6 = vld [vmem:[%s3711_s4 + $0x8] sm:$0xff]   ;;  %v3004_v7 = vld [vmem:[%s3710_s3] sm:$0xff]  }
   0x4   :  { %2563 = vmatprep.subr.bf16.mxu0 %v2916_v4  ;;  %2559 = vmatprep.mubr.msk.bf16.mxu1 %vm2917_vm1, %v2916_v4  ;;  %v3011_v8 = vld [vmem:[%s3711_s4] sm:$0xff]  }
   0x5   :  { %2556 = vmatpush3.bf16.msra.mxu1 %v2990_v5 }
   0x6   :  { %2440 = vmatmul.mubr.msk.bf16.vlgmr.msra.gmra.mxu0 %vm65_vm0, %v2735_v3  ;;  %2557 = vmatprep.subr.bf16.mxu1 %v2916_v4 }
   0x7   :  { %2564 = vmatpush3.bf16.msra.mxu0 %v2996_v6  ;;  %2567 = vmatprep.mubr.msk.bf16.mxu0 %vm2917_vm1, %v2916_v4 }
   0x8   :  { %2565 = vmatprep.subr.bf16.mxu0 %v2916_v4 }
   0x9   :  { %2558 = vmatpush3.bf16.msra.mxu1 %v3004_v7 }
   0xa   :  { %2571 = vmatprep.subr.bf16.mxu1 %v2916_v4 }
   0xb   :  { %2566 = vmatpush3.bf16.msra.mxu0 %v3011_v8 }
   0xc   :  { %2560 = vmatmul.mubr.bf16.vlgmr.msra.gmra.mxu1 %v2915_v2  ;;  %2579 = vmatprep.subr.bf16.mxu0 %v2916_v4 }
   0xd   :  { %15 = vsyncpa [#allocation5], 0  ;;  %2572 = vmatpush3.bf16.msra.mxu1 %v2990_v5  ;;  %2575 = vmatprep.mubr.msk.bf16.mxu1 %vm2917_vm1, %v2916_v4  ;;  %v40_v9 = vlaneseq  ;;  %v2918_v12 = vmov 1983009808   ;;  %v38_v15 = vld [vmem:[%s3712_s5] sm:$0x3] }
   0xe   :  { %2568 = vmatmul.mubr.bf16.vlgmr.msra.gmra.mxu0 %v2915_v2  ;;  %2573 = vmatprep.subr.bf16.mxu1 %v2916_v4  ;;  %v116_v13 = vunpack.c.l.s4 %v2918_v12  ;;  %s2919_s5 = smov 64   ;;  %s2920_s23 = smov 32   ;;  %v3059_v3 = vld [vmem:[%s3707_s0] sm:$0x3]  ;;  %vm196_vm5 = vcmask 261120   ;;  %vm362_vm7 = vcmask 254976  }
   0xf   :  { %2580 = vmatpush3.bf16.msra.mxu0 %v2996_v6  ;;  %2583 = vmatprep.mubr.msk.bf16.mxu0 %vm2917_vm1, %v2916_v4  ;;  %v3035_v10 = vshrl.u32 %v40_v9, 7  ;;  %vm344_vm2 = vcmp.gt.s32.totalorder %v3059_v3, 7  ;;  %vm343_vm3 = vcmp.gt.s32.totalorder %v3059_v3, 0  ;;  %s2921_s26 = smov 96   ;;  %vm574_vm8 = vcmp.gt.s32.totalorder %v3059_v3, 6  ;;  %s2922_s29 = smov [#allocation4]  }
  0x10   :  { %2581 = vmatprep.subr.bf16.mxu0 %v2916_v4  ;;  %v117_v17 = vunpack.c.0.s8 %v116_v13  ;;  %v364_v9 = vsel %vm344_vm2, 1, %v2915_v2  ;;  %vm573_vm9 = vcmp.gt.s32.totalorder %v3059_v3, 1  ;;  %vm804_vm12 = vcmp.gt.s32.totalorder %v3059_v3, 5  ;;  %s2422_s30 = sshll.u32 %s2922_s29, 4  ;;  %s2423_s30 = int_to_ptr.vmem [resolvable:$true] %s2422_s30 }
  0x11   :  { %2574 = vmatpush3.bf16.msra.mxu1 %v3004_v7  ;;  %v42_v11 = vsub.s32 0, %v3035_v10  ;;  %v46_v14 = vsub.s32 1, %v3035_v10  ;;  %vm803_vm13 = vcmp.gt.s32.totalorder %v3059_v3, 2  ;;  %vm1034_vm2 = vcmp.gt.s32.totalorder %v3059_v3, 4  ;;  %s2893_s10 = scalar_lea.vmem %s2423_s30, 128  ;;  %p2898_p1 = scmp.lt.s32.totalorder %s2423_s30, %s2423_s30 }
  0x12   :  { %2587 = vmatprep.subr.bf16.mxu1 %v2916_v4  ;;  %v3047_v22 = vsub.s32 %v117_v17, %v3035_v10  ;;  %p2894_p0 = scmp.ne.s32.totalorder %s2423_s30, %s2893_s10  ;;  %p2899_p2 = scmp.lt.s32.totalorder %s2893_s10, %s2893_s10 }
  0x13   :  { %2582 = vmatpush3.bf16.msra.mxu0 %v3011_v8  ;;  %v43_v16 = vrot.slane %v38_v15, %v42_v11  ;;  %v47_v18 = vrot.slane %v38_v15, %v46_v14 }
  0x14   :  { %2595 = vmatprep.subr.bf16.mxu0 %v2916_v4  ;;  %p2900_p3 = por %p2899_p2, %p2898_p1 }
  0x16   :  { %p2901_p4 = pnand %p2900_p3, %p2894_p0 }
  0xc6   :  { %v103_v19 = vpop.f32.mrf.mxu0 }
  0xc7   :  { %v104_v21 = vadd.f32 %v103_v19, %v43_v16 }
  0xc8   :  { %v105_v20 = vpop.f32.mrf.mxu0 }
  0xc9   :  { %v106_v23 = vadd.f32 %v105_v20, %v47_v18 }
  0xca   :  { %v107_v24 = vpop.f32.mrf.mxu0 }
  0xcb   :  { %v114_v25 = vcombine.low %v104_v21, %v106_v23  ;;  %v128_v26 = vcombine.high %v104_v21, %v106_v23  ;;  %v108_v31 = vadd.f32 %v107_v24, %v43_v16  ;;  %v345_v21 = vsel %vm343_vm3, 1, %v2915_v2 }
  0xcc   :  { %v109_v27 = vpop.f32.mrf.mxu0  ;;  %v234_v28 = vpop.f32.mrf.mxu1  ;;  %vm1033_vm3 = vcmp.gt.s32.totalorder %v3059_v3, 3 }
  0xcd   :  { %v121_v29 = vrot.slane %v114_v25, %v3047_v22  ;;  %2441 = vst.sshfl [vmem:[#allocation2] sm:$0x33 pattern:$0x76325410] %v114_v25  ;;  %v135_v30 = vrot.slane %v128_v26, %v3047_v22  ;;  %v110_v32 = vadd.f32 %v109_v27, %v47_v18 }
  0xce   :  { %2442 = vst.sshfl [vmem:[#allocation2 + $0x8] sm:$0x33 pattern:$0x76325410] %v128_v26  ;;  %v288_v33 = vpop.f32.mrf.mxu0  ;;  %v2561_v34 = vpop.f32.mrf.mxu1 }
  0xcf   :  { %v124_v35 = vcombine.high %v121_v29, %v121_v29  ;;  %v139_v36 = vcombine.high %v135_v30, %v135_v30  ;;  %v145_v37 = vcombine.low %v108_v31, %v110_v32  ;;  %v160_v38 = vcombine.high %v108_v31, %v110_v32 }
  0xd0   :  { %v2569_v39 = vpop.f32.mrf.mxu0  ;;  %v237_v40 = vpop.f32.mrf.mxu1 }
  0xd1   :  { %127 = vst [vmem:[#allocation2 + $0x4] sm:$0xf] %v124_v35  ;;  %142 = vst [vmem:[#allocation2 + $0xc] sm:$0xf] %v139_v36  ;;  %v152_v41 = vrot.slane %v145_v37, %v3047_v22  ;;  %v167_v42 = vrot.slane %v160_v38, %v3047_v22 }
  0xd2   :  { %2443 = vst.sshfl [vmem:[#allocation2 + $0x10] sm:$0x33 pattern:$0x76325410] %v145_v37  ;;  %v291_v43 = vpop.f32.mrf.mxu0  ;;  %v2562_v44 = vpop.f32.mrf.mxu1 }
  0xd3   :  { %2444 = vst.sshfl [vmem:[#allocation2 + $0x18] sm:$0x33 pattern:$0x76325410] %v160_v38  ;;  %v156_v45 = vcombine.high %v152_v41, %v152_v41  ;;  %v171_v46 = vcombine.high %v167_v42, %v167_v42 }
  0xd4   :  { %v2570_v47 = vpop.f32.mrf.mxu0  ;;  %v183_v48 = vld [vmem:[#allocation2] sm:$0x3] }
  0xd5   :  { %159 = vst [vmem:[#allocation2 + $0x14] sm:$0xf] %v156_v45  ;;  %174 = vst [vmem:[#allocation2 + $0x1c] sm:$0xf] %v171_v46  ;;  %v240_v51 = vadd.f32 %v234_v28, %v183_v48 }
  0xd7   :  { %v2449_v55 = vmul.f32 -1.442695, %v240_v51 }
  0xda   :  { %v457_v45 = vld [vmem:[#allocation2 + $0x1a] sm:$0x3] }
  0xdc   :  { %v241_v49 = vld [vmem:[#allocation2 + $0x1e] sm:$0x3] }
  0xdd   :  { %v294_v50 = vadd.f32 %v288_v33, %v241_v49  ;;  %v411_v49 = vld [vmem:[#allocation2 + $0x4] sm:$0x3] }
  0xdf   :  { %2748 = vtanh.f32 %v294_v50  ;;  %v2450_v54 = vmul.f32 -1.442695, %v294_v50 }
  0xe0   :  { %2750 = vtanh.f32 %v240_v51 }
  0xe1   :  { %2752 = vpow2.f32 %v2450_v54 }
  0xe2   :  { %2754 = vpow2.f32 %v2449_v55 }
  0xec   :  { %v2749_v52 = vpop.eup %2748 }
  0xed   :  { %328 = vrot.lane.b32.xlu0 %v2749_v52, %s2919_s5  ;;  %v2751_v53 = vpop.eup %2750 }
  0xee   :  { %v2753_v56 = vpop.eup %2752 }
  0xef   :  { %v322_v57 = vadd.f32 1.0, %v2753_v56  ;;  %v2755_v58 = vpop.eup %2754 }
  0xf0   :  { %v298_v59 = vadd.f32 1.0, %v2755_v58 }
  0xf1   :  { %304 = vrot.lane.b32.xlu0 %v2751_v53, %s2919_s5  ;;  %2756 = vrcp.f32 %v322_v57 }
  0xf2   :  { %2758 = vrcp.f32 %v298_v59 }
  0xfe   :  { %v2757_v60 = vpop.eup %2756 }
  0xff   :  { %v2759_v63 = vpop.eup %2758  ;;  %v326_v12 = vmul.f32 0.0, %v2757_v60 }
 0x100   :  { %v302_v16 = vmul.f32 0.0, %v2759_v63 }
 0x15f   :  { %v329_v61 = vpop.permute.xlu0 %328 }
 0x160   :  { %v331_v62 = vmul.f32 %v2757_v60, %v329_v61 }
 0x162   :  { %333 = vrot.lane.b32.xlu1 %v331_v62, %s2920_s23 }
 0x163   :  { %v305_v0 = vpop.permute.xlu0 %304 }
 0x164   :  { %v307_v1 = vmul.f32 %v2759_v63, %v305_v0 }
 0x166   :  { %309 = vrot.lane.b32.xlu1 %v307_v1, %s2920_s23 }
 0x16a   :  { %366 = vperm.xlu1 %2730, %v364_v9  }
 0x1d4   :  { %v334_v13 = vpop.permute.xlu1 %333 }
 0x1d5   :  { %v336_v15 = vadd.f32 %v334_v13, %v326_v12 }
 0x1d7   :  { %2760 = vtanh.f32 %v336_v15  ;;  %v406_v29 = vrot.slane %v336_v15, %v3047_v22 }
 0x1d8   :  { %v310_v17 = vpop.permute.xlu1 %309 }
 0x1d9   :  { %v312_v18 = vadd.f32 %v310_v17, %v302_v16  ;;  %v593_v17 = vsel %vm574_vm8, 1, %v2915_v2 }
 0x1db   :  { %2762 = vtanh.f32 %v312_v18  ;;  %v394_v30 = vrot.slane %v312_v18, %v3047_v22 }
 0x1e4   :  { %v2761_v19 = vpop.eup %2760 }
 0x1e5   :  { %339 = vrot.lane.b32.xlu0 %v2761_v19, %s2919_s5  ;;  %v3076_v31 = vpop.permute.xlu1 %366 }
 0x1e6   :  { %vm368_vm4 = vcmp.eq.s32.totalorder %v3076_v31, 1 }
 0x1e8   :  { %v2763_v20 = vpop.eup %2762 }
 0x1e9   :  { %315 = vrot.lane.b32.xlu0 %v2763_v20, %s2919_s5 }
 0x1ed   :  { %347 = vperm.xlu0 %2731, %v345_v21  }
 0x257   :  { %v340_v23 = vpop.permute.xlu0 %339 }
 0x258   :  { %v342_v24 = vmul.f32 %v2757_v60, %v340_v23 }
 0x25a   :  { %v376_v25 = vrot.slane %v342_v24, %v3047_v22 }
 0x25b   :  { %v316_v26 = vpop.permute.xlu0 %315 }
 0x25c   :  { %v318_v27 = vmul.f32 %v2759_v63, %v316_v26  ;;  %377 = vrot.lane.b32.xlu1 %v376_v25, %s2920_s23 }
 0x25e   :  { %v357_v28 = vrot.slane %v318_v27, %v3047_v22 }
 0x260   :  { %358 = vrot.lane.b32.xlu1 %v357_v28, %s2920_s23 }
 0x264   :  { %407 = vrot.lane.b32.xlu1 %v406_v29, %s2921_s26  ;;  %v575_v29 = vsel %vm573_vm9, 1, %v2915_v2 }
 0x268   :  { %395 = vrot.lane.b32.xlu1 %v394_v30, %s2921_s26  ;;  %v3078_v32 = vpop.permute.xlu0 %347 }
 0x269   :  { %vm349_vm6 = vcmp.eq.s32.totalorder %v3078_v32, 1 }
 0x2ce   :  { %v378_v33 = vpop.permute.xlu1 %377 }
 0x2cf   :  { %v3083_v34 = vsel %vm368_vm4, %v378_v33, 0.0 }
 0x2d0   :  { %v458_v35 = vpack.c.bf16 %v3083_v34, %v3083_v34 }
 0x2d2   :  { %2584 = vmatmul.mubr.msk.bf16.vlgmr.msra.gmra.mxu0 %vm196_vm5, %v458_v35  ;;  %v359_v36 = vpop.permute.xlu1 %358 }
 0x2d3   :  { %v3091_v37 = vsel %vm349_vm6, %v359_v36, 0.0  ;;  %2596 = vmatpush3.bf16.msra.mxu0 %v2996_v6  ;;  %2599 = vmatprep.mubr.msk.bf16.mxu0 %vm2917_vm1, %v2916_v4 }
 0x2d4   :  { %v412_v38 = vpack.c.bf16 %v3091_v37, %v3091_v37  ;;  %2597 = vmatprep.subr.bf16.mxu0 %v2916_v4  ;;  %363 = vst.msk [vmem:[#allocation3] sm:$0x3] %vm362_vm7, %v3091_v37 }
 0x2d6   :  { %v408_v39 = vpop.permute.xlu1 %407  ;;  %2576 = vmatmul.mubr.msk.bf16.vlgmr.msra.gmra.mxu1 %vm196_vm5, %v412_v38 }
 0x2d7   :  { %v3104_v40 = vsel %vm368_vm4, %v408_v39, 0.0  ;;  %2598 = vmatpush3.bf16.msra.mxu0 %v3011_v8  ;;  %2588 = vmatpush3.bf16.msra.mxu1 %v2990_v5 }
 0x2d8   :  { %v552_v41 = vrot.slane %v3104_v40, %v3047_v22  ;;  %2589 = vmatprep.subr.bf16.mxu1 %v2916_v4  ;;  %2591 = vmatprep.mubr.msk.bf16.mxu1 %vm2917_vm1, %v2916_v4 }
 0x2d9   :  { %2611 = vmatprep.subr.bf16.mxu0 %v2916_v4 }
 0x2da   :  { %553 = vrot.lane.b32.xlu1 %v552_v41, %s2920_s23  ;;  %v396_v42 = vpop.permute.xlu1 %395 }
 0x2db   :  { %v3117_v43 = vsel %vm349_vm6, %v396_v42, 0.0  ;;  %2590 = vmatpush3.bf16.msra.mxu1 %v3004_v7 }
 0x2dc   :  { %v517_v44 = vrot.slane %v3117_v43, %v3047_v22  ;;  %2603 = vmatprep.subr.bf16.mxu1 %v2916_v4 }
 0x2de   :  { %518 = vrot.lane.b32.xlu1 %v517_v44, %s2920_s23 }
 0x34c   :  { %v554_v18 = vpop.permute.xlu1 %553 }
 0x350   :  { %v519_v23 = vpop.permute.xlu1 %518 }
 0x392   :  { %v496_v46 = vpop.f32.mrf.mxu0 }
 0x393   :  { %v502_v47 = vadd.f32 %v496_v46, %v457_v45 }
 0x394   :  { %v2585_v48 = vpop.f32.mrf.mxu0 }
 0x395   :  { %2764 = vtanh.f32 %v502_v47  ;;  %v2454_v59 = vmul.f32 -1.442695, %v502_v47 }
 0x396   :  { %v450_v50 = vpop.f32.mrf.mxu1  ;;  %v499_v51 = vpop.f32.mrf.mxu0 }
 0x397   :  { %v456_v52 = vadd.f32 %v450_v50, %v411_v49 }
 0x398   :  { %v2577_v53 = vpop.f32.mrf.mxu1  ;;  %v2586_v54 = vpop.f32.mrf.mxu0 }
 0x399   :  { %2766 = vtanh.f32 %v456_v52  ;;  %v2453_v60 = vmul.f32 -1.442695, %v456_v52 }
 0x39a   :  { %v453_v55 = vpop.f32.mrf.mxu1  ;;  %2768 = vpow2.f32 %v2454_v59 }
 0x39b   :  { %2770 = vpow2.f32 %v2453_v60  ;;  %v641_v60 = vld [vmem:[#allocation2 + $0x8] sm:$0x3] }
 0x39c   :  { %v2578_v56 = vpop.f32.mrf.mxu1 }
 0x3a2   :  { %v2765_v57 = vpop.eup %2764 }
 0x3a3   :  { %558 = vrot.lane.b32.xlu0 %v2765_v57, %s2919_s5 }
 0x3a6   :  { %v2767_v58 = vpop.eup %2766 }
 0x3a7   :  { %523 = vrot.lane.b32.xlu0 %v2767_v58, %s2919_s5  ;;  %v2769_v61 = vpop.eup %2768 }
 0x3a8   :  { %v541_v62 = vadd.f32 1.0, %v2769_v61  ;;  %v2771_v63 = vpop.eup %2770 }
 0x3a9   :  { %v506_v0 = vadd.f32 1.0, %v2771_v63 }
 0x3aa   :  { %2772 = vrcp.f32 %v541_v62 }
 0x3ab   :  { %2774 = vrcp.f32 %v506_v0 }
 0x3b7   :  { %v2773_v1 = vpop.eup %2772 }
 0x3b8   :  { %v2775_v13 = vpop.eup %2774  ;;  %v556_v19 = vmul.f32 %v2773_v1, %v554_v18 }
 0x3b9   :  { %v521_v24 = vmul.f32 %v2775_v13, %v519_v23 }
 0x415   :  { %v559_v9 = vpop.permute.xlu0 %558 }
 0x416   :  { %v561_v12 = vmul.f32 %v2773_v1, %v559_v9 }
 0x418   :  { %563 = vrot.lane.b32.xlu0 %v561_v12, %s2920_s23 }
 0x419   :  { %v524_v15 = vpop.permute.xlu0 %523 }
 0x41a   :  { %v526_v16 = vmul.f32 %v2775_v13, %v524_v15 }
 0x41c   :  { %528 = vrot.lane.b32.xlu0 %v526_v16, %s2920_s23 }
 0x420   :  { %595 = vperm.xlu0 %2731, %v593_v17  }
 0x48a   :  { %v564_v20 = vpop.permute.xlu0 %563 }
 0x48b   :  { %v566_v21 = vadd.f32 %v564_v20, %v556_v19 }
 0x48d   :  { %2776 = vtanh.f32 %v566_v21  ;;  %v636_v30 = vrot.slane %v566_v21, %v3047_v22 }
 0x48e   :  { %v529_v25 = vpop.permute.xlu0 %528 }
 0x48f   :  { %v531_v26 = vadd.f32 %v529_v25, %v521_v24 }
 0x491   :  { %2778 = vtanh.f32 %v531_v26  ;;  %v623_v33 = vrot.slane %v531_v26, %v3047_v22 }
 0x49a   :  { %v2777_v27 = vpop.eup %2776 }
 0x49b   :  { %569 = vrot.lane.b32.xlu1 %v2777_v27, %s2919_s5  ;;  %v3144_v45 = vpop.permute.xlu0 %595 }
 0x49c   :  { %vm597_vm10 = vcmp.eq.s32.totalorder %v3144_v45, 1 }
 0x49e   :  { %v2779_v28 = vpop.eup %2778 }
 0x49f   :  { %534 = vrot.lane.b32.xlu1 %v2779_v28, %s2919_s5 }
 0x4a3   :  { %577 = vperm.xlu1 %2730, %v575_v29   ;;  %v823_v29 = vsel %vm804_vm12, 1, %v2915_v2 }
 0x4a7   :  { %637 = vrot.lane.b32.xlu1 %v636_v30, %s2921_s26 }
 0x4ab   :  { %624 = vrot.lane.b32.xlu1 %v623_v33, %s2921_s26 }
 0x50d   :  { %v570_v35 = vpop.permute.xlu1 %569 }
 0x50e   :  { %v572_v36 = vmul.f32 %v2773_v1, %v570_v35 }
 0x510   :  { %v605_v38 = vrot.slane %v572_v36, %v3047_v22 }
 0x511   :  { %v535_v39 = vpop.permute.xlu1 %534 }
 0x512   :  { %v537_v41 = vmul.f32 %v2775_v13, %v535_v39  ;;  %606 = vrot.lane.b32.xlu0 %v605_v38, %s2920_s23 }
 0x514   :  { %v587_v42 = vrot.slane %v537_v41, %v3047_v22 }
 0x516   :  { %588 = vrot.lane.b32.xlu0 %v587_v42, %s2920_s23 }
 0x51e   :  { %v3142_v44 = vpop.permute.xlu1 %577 }
 0x51f   :  { %vm579_vm11 = vcmp.eq.s32.totalorder %v3142_v44, 1  ;;  %v2108_v44 = vadd.s32 8, %v3035_v10 }
 0x522   :  { %v638_v46 = vpop.permute.xlu1 %637 }
 0x523   :  { %v3150_v47 = vsel %vm597_vm10, %v638_v46, %v3104_v40 }
 0x524   :  { %v782_v48 = vrot.slane %v3150_v47, %v3047_v22 }
 0x526   :  { %v625_v49 = vpop.permute.xlu1 %624  ;;  %783 = vrot.lane.b32.xlu1 %v782_v48, %s2920_s23 }
 0x527   :  { %v3159_v50 = vsel %vm579_vm11, %v625_v49, %v3117_v43  ;;  %v805_v49 = vsel %vm803_vm13, 1, %v2915_v2 }
 0x528   :  { %v747_v51 = vrot.slane %v3159_v50, %v3047_v22 }
 0x52a   :  { %748 = vrot.lane.b32.xlu1 %v747_v51, %s2920_s23 }
 0x584   :  { %v3164_v40 = vpop.permute.xlu0 %606 }
 0x585   :  { %v3170_v52 = vsel %vm597_vm10, %v3164_v40, %v3083_v34 }
 0x586   :  { %v688_v53 = vpack.c.bf16 %v3170_v52, %v3170_v52 }
 0x588   :  { %2600 = vmatmul.mubr.msk.bf16.vlgmr.msra.gmra.mxu0 %vm196_vm5, %v688_v53  ;;  %v589_v43 = vpop.permute.xlu0 %588 }
 0x589   :  { %v591_v54 = vsel %vm579_vm11, %v589_v43, 0.0  ;;  %v3180_v55 = vsel %vm579_vm11, %v589_v43, %v3091_v37  ;;  %2612 = vmatpush3.bf16.msra.mxu0 %v2996_v6  ;;  %2615 = vmatprep.mubr.msk.bf16.mxu0 %vm2917_vm1, %v2916_v4  ;;  %v687_v37 = vld [vmem:[#allocation2 + $0x16] sm:$0x3] }
 0x58a   :  { %592 = vst.msk [vmem:[#allocation3 + $0x2] sm:$0x3] %vm362_vm7, %v591_v54  ;;  %v642_v56 = vpack.c.bf16 %v3180_v55, %v3180_v55  ;;  %2613 = vmatprep.subr.bf16.mxu0 %v2916_v4 }
 0x58c   :  { %2592 = vmatmul.mubr.msk.bf16.vlgmr.msra.gmra.mxu1 %vm196_vm5, %v642_v56 }
 0x58d   :  { %2614 = vmatpush3.bf16.msra.mxu0 %v3011_v8  ;;  %2604 = vmatpush3.bf16.msra.mxu1 %v2990_v5 }
 0x58e   :  { %2605 = vmatprep.subr.bf16.mxu1 %v2916_v4  ;;  %2607 = vmatprep.mubr.msk.bf16.mxu1 %vm2917_vm1, %v2916_v4 }
 0x58f   :  { %2627 = vmatprep.subr.bf16.mxu0 %v2916_v4 }
 0x591   :  { %2606 = vmatpush3.bf16.msra.mxu1 %v3004_v7 }
 0x592   :  { %2619 = vmatprep.subr.bf16.mxu1 %v2916_v4 }
 0x598   :  { %v784_v30 = vpop.permute.xlu1 %783 }
 0x59c   :  { %v749_v38 = vpop.permute.xlu1 %748 }
 0x648   :  { %v726_v57 = vpop.f32.mrf.mxu0 }
 0x649   :  { %v732_v58 = vadd.f32 %v726_v57, %v687_v37 }
 0x64a   :  { %v2601_v59 = vpop.f32.mrf.mxu0 }
 0x64b   :  { %2780 = vtanh.f32 %v732_v58  ;;  %v2458_v16 = vmul.f32 -1.442695, %v732_v58 }
 0x64c   :  { %v680_v61 = vpop.f32.mrf.mxu1  ;;  %v729_v62 = vpop.f32.mrf.mxu0 }
 0x64d   :  { %v686_v63 = vadd.f32 %v680_v61, %v641_v60 }
 0x64e   :  { %v2593_v0 = vpop.f32.mrf.mxu1  ;;  %v2602_v1 = vpop.f32.mrf.mxu0 }
 0x64f   :  { %2782 = vtanh.f32 %v686_v63  ;;  %v2457_v17 = vmul.f32 -1.442695, %v686_v63 }
 0x650   :  { %v683_v9 = vpop.f32.mrf.mxu1  ;;  %2784 = vpow2.f32 %v2458_v16 }
 0x651   :  { %2786 = vpow2.f32 %v2457_v17 }
 0x652   :  { %v2594_v12 = vpop.f32.mrf.mxu1 }
 0x658   :  { %v2781_v13 = vpop.eup %2780 }
 0x659   :  { %788 = vrot.lane.b32.xlu0 %v2781_v13, %s2919_s5 }
 0x65c   :  { %v2783_v15 = vpop.eup %2782 }
 0x65d   :  { %753 = vrot.lane.b32.xlu0 %v2783_v15, %s2919_s5  ;;  %v2785_v18 = vpop.eup %2784 }
 0x65e   :  { %v771_v19 = vadd.f32 1.0, %v2785_v18  ;;  %v2787_v20 = vpop.eup %2786 }
 0x65f   :  { %v736_v21 = vadd.f32 1.0, %v2787_v20  ;;  %v871_v20 = vld [vmem:[#allocation2 + $0xc] sm:$0x3] }
 0x660   :  { %2788 = vrcp.f32 %v771_v19 }
 0x661   :  { %2790 = vrcp.f32 %v736_v21 }
 0x66d   :  { %v2789_v23 = vpop.eup %2788 }
 0x66e   :  { %v2791_v26 = vpop.eup %2790  ;;  %v786_v33 = vmul.f32 %v2789_v23, %v784_v30 }
 0x66f   :  { %v751_v39 = vmul.f32 %v2791_v26, %v749_v38 }
 0x6cb   :  { %v789_v24 = vpop.permute.xlu0 %788 }
 0x6cc   :  { %v791_v25 = vmul.f32 %v2789_v23, %v789_v24 }
 0x6ce   :  { %793 = vrot.lane.b32.xlu0 %v791_v25, %s2920_s23 }
 0x6cf   :  { %v754_v27 = vpop.permute.xlu0 %753 }
 0x6d0   :  { %v756_v28 = vmul.f32 %v2791_v26, %v754_v27 }
 0x6d2   :  { %758 = vrot.lane.b32.xlu0 %v756_v28, %s2920_s23 }
 0x6d6   :  { %825 = vperm.xlu0 %2731, %v823_v29  }
 0x740   :  { %v794_v35 = vpop.permute.xlu0 %793 }
 0x741   :  { %v796_v36 = vadd.f32 %v794_v35, %v786_v33 }
 0x743   :  { %2792 = vtanh.f32 %v796_v36  ;;  %v866_v51 = vrot.slane %v796_v36, %v3047_v22 }
 0x744   :  { %v759_v41 = vpop.permute.xlu0 %758 }
 0x745   :  { %v761_v42 = vadd.f32 %v759_v41, %v751_v39 }
 0x747   :  { %2794 = vtanh.f32 %v761_v42  ;;  %v853_v53 = vrot.slane %v761_v42, %v3047_v22 }
 0x750   :  { %v2793_v46 = vpop.eup %2792 }
 0x751   :  { %799 = vrot.lane.b32.xlu1 %v2793_v46, %s2919_s5  ;;  %v3218_v60 = vpop.permute.xlu0 %825 }
 0x752   :  { %vm827_vm14 = vcmp.eq.s32.totalorder %v3218_v60, 1 }
 0x754   :  { %v2795_v48 = vpop.eup %2794 }
 0x755   :  { %764 = vrot.lane.b32.xlu1 %v2795_v48, %s2919_s5 }
 0x759   :  { %807 = vperm.xlu1 %2730, %v805_v49  }
 0x75d   :  { %867 = vrot.lane.b32.xlu1 %v866_v51, %s2921_s26 }
 0x761   :  { %854 = vrot.lane.b32.xlu1 %v853_v53, %s2921_s26 }
 0x7c3   :  { %v800_v43 = vpop.permute.xlu1 %799 }
 0x7c4   :  { %v802_v54 = vmul.f32 %v2789_v23, %v800_v43  ;;  %v1053_v43 = vsel %vm1034_vm2, 1, %v2915_v2 }
 0x7c6   :  { %v835_v56 = vrot.slane %v802_v54, %v3047_v22 }
 0x7c7   :  { %v765_v37 = vpop.permute.xlu1 %764 }
 0x7c8   :  { %v767_v57 = vmul.f32 %v2791_v26, %v765_v37  ;;  %836 = vrot.lane.b32.xlu0 %v835_v56, %s2920_s23 }
 0x7ca   :  { %v817_v58 = vrot.slane %v767_v57, %v3047_v22 }
 0x7cc   :  { %818 = vrot.lane.b32.xlu0 %v817_v58, %s2920_s23 }
 0x7d4   :  { %v3216_v59 = vpop.permute.xlu1 %807 }
 0x7d5   :  { %vm809_vm15 = vcmp.eq.s32.totalorder %v3216_v59, 1  ;;  %v2109_v59 = vshra.s32 %v3035_v10, 1 }
 0x7d8   :  { %v868_v61 = vpop.permute.xlu1 %867 }
 0x7d9   :  { %v3224_v62 = vsel %vm827_vm14, %v868_v61, %v3150_v47 }
 0x7da   :  { %v1012_v63 = vrot.slane %v3224_v62, %v3047_v22 }
 0x7dc   :  { %v855_v0 = vpop.permute.xlu1 %854  ;;  %1013 = vrot.lane.b32.xlu1 %v1012_v63, %s2920_s23 }
 0x7dd   :  { %v3233_v1 = vsel %vm809_vm15, %v855_v0, %v3159_v50 }
 0x7de   :  { %v977_v9 = vrot.slane %v3233_v1, %v3047_v22 }
 0x7e0   :  { %978 = vrot.lane.b32.xlu1 %v977_v9, %s2920_s23 }
 0x83a   :  { %v3238_v47 = vpop.permute.xlu0 %836 }
 0x83b   :  { %v3244_v12 = vsel %vm827_vm14, %v3238_v47, %v3170_v52 }
 0x83c   :  { %v918_v13 = vpack.c.bf16 %v3244_v12, %v3244_v12 }
 0x83e   :  { %2616 = vmatmul.mubr.msk.bf16.vlgmr.msra.gmra.mxu0 %vm196_vm5, %v918_v13  ;;  %v819_v50 = vpop.permute.xlu0 %818 }
 0x83f   :  { %v821_v15 = vsel %vm809_vm15, %v819_v50, 0.0  ;;  %v3254_v16 = vsel %vm809_vm15, %v819_v50, %v3180_v55  ;;  %2628 = vmatpush3.bf16.msra.mxu0 %v2996_v6  ;;  %2631 = vmatprep.mubr.msk.bf16.mxu0 %vm2917_vm1, %v2916_v4  ;;  %v917_v55 = vld [vmem:[#allocation2 + $0x12] sm:$0x3]  ;;  %v1035_v50 = vsel %vm1033_vm3, 1, %v2915_v2 }
 0x840   :  { %822 = vst.msk [vmem:[#allocation3 + $0x4] sm:$0x3] %vm362_vm7, %v821_v15  ;;  %v872_v52 = vpack.c.bf16 %v3254_v16, %v3254_v16  ;;  %2629 = vmatprep.subr.bf16.mxu0 %v2916_v4 }
 0x842   :  { %2608 = vmatmul.mubr.msk.bf16.vlgmr.msra.gmra.mxu1 %vm196_vm5, %v872_v52 }
 0x843   :  { %2630 = vmatpush3.bf16.msra.mxu0 %v3011_v8  ;;  %2620 = vmatpush3.bf16.msra.mxu1 %v2990_v5 }
 0x844   :  { %2621 = vmatprep.subr.bf16.mxu1 %v2916_v4  ;;  %2623 = vmatprep.mubr.msk.bf16.mxu1 %vm2917_vm1, %v2916_v4 }
 0x845   :  { %2643 = vmatprep.subr.bf16.mxu0 %v2916_v4 }
 0x847   :  { %2622 = vmatpush3.bf16.msra.mxu1 %v3004_v7 }
 0x848   :  { %2635 = vmatprep.subr.bf16.mxu1 %v2916_v4 }
 0x84e   :  { %v1014_v54 = vpop.permute.xlu1 %1013 }
 0x852   :  { %v979_v58 = vpop.permute.xlu1 %978 }
 0x8fe   :  { %v956_v17 = vpop.f32.mrf.mxu0 }
 0x8ff   :  { %v962_v18 = vadd.f32 %v956_v17, %v917_v55 }
 0x900   :  { %v2617_v19 = vpop.f32.mrf.mxu0 }
 0x901   :  { %2796 = vtanh.f32 %v962_v18  ;;  %v2462_v33 = vmul.f32 -1.442695, %v962_v18 }
 0x902   :  { %v910_v21 = vpop.f32.mrf.mxu1  ;;  %v959_v23 = vpop.f32.mrf.mxu0 }
 0x903   :  { %v916_v24 = vadd.f32 %v910_v21, %v871_v20 }
 0x904   :  { %v2609_v25 = vpop.f32.mrf.mxu1  ;;  %v2618_v26 = vpop.f32.mrf.mxu0 }
 0x905   :  { %2798 = vtanh.f32 %v916_v24  ;;  %v2461_v35 = vmul.f32 -1.442695, %v916_v24 }
 0x906   :  { %v913_v27 = vpop.f32.mrf.mxu1  ;;  %2800 = vpow2.f32 %v2462_v33 }
 0x907   :  { %2802 = vpow2.f32 %v2461_v35 }
 0x908   :  { %v2610_v28 = vpop.f32.mrf.mxu1 }
 0x90e   :  { %v2797_v29 = vpop.eup %2796 }
 0x90f   :  { %1018 = vrot.lane.b32.xlu0 %v2797_v29, %s2919_s5 }
 0x912   :  { %v2799_v30 = vpop.eup %2798 }
 0x913   :  { %983 = vrot.lane.b32.xlu0 %v2799_v30, %s2919_s5  ;;  %v2801_v36 = vpop.eup %2800 }
 0x914   :  { %v1001_v38 = vadd.f32 1.0, %v2801_v36  ;;  %v2803_v39 = vpop.eup %2802 }
 0x915   :  { %v966_v41 = vadd.f32 1.0, %v2803_v39 }
 0x916   :  { %2804 = vrcp.f32 %v1001_v38 }
 0x917   :  { %2806 = vrcp.f32 %v966_v41  ;;  %v1101_v41 = vld [vmem:[#allocation2 + $0x10] sm:$0x3] }
 0x923   :  { %v2805_v42 = vpop.eup %2804 }
 0x924   :  { %v2807_v49 = vpop.eup %2806  ;;  %v1016_v56 = vmul.f32 %v2805_v42, %v1014_v54 }
 0x925   :  { %v981_v61 = vmul.f32 %v2807_v49, %v979_v58 }
 0x981   :  { %v1019_v46 = vpop.permute.xlu0 %1018 }
 0x982   :  { %v1021_v48 = vmul.f32 %v2805_v42, %v1019_v46 }
 0x984   :  { %1023 = vrot.lane.b32.xlu0 %v1021_v48, %s2920_s23 }
 0x985   :  { %v984_v51 = vpop.permute.xlu0 %983 }
 0x986   :  { %v986_v53 = vmul.f32 %v2807_v49, %v984_v51 }
 0x988   :  { %988 = vrot.lane.b32.xlu0 %v986_v53, %s2920_s23 }
 0x98c   :  { %1055 = vperm.xlu0 %2731, %v1053_v43  }
 0x9f6   :  { %v1024_v37 = vpop.permute.xlu0 %1023 }
 0x9f7   :  { %v1026_v57 = vadd.f32 %v1024_v37, %v1016_v56 }
 0x9f9   :  { %2808 = vtanh.f32 %v1026_v57  ;;  %v1096_v15 = vrot.slane %v1026_v57, %v3047_v22 }
 0x9fa   :  { %v989_v63 = vpop.permute.xlu0 %988 }
 0x9fb   :  { %v991_v0 = vadd.f32 %v989_v63, %v981_v61 }
 0x9fd   :  { %2810 = vtanh.f32 %v991_v0  ;;  %v1083_v52 = vrot.slane %v991_v0, %v3047_v22 }
 0xa06   :  { %v2809_v9 = vpop.eup %2808 }
 0xa07   :  { %1029 = vrot.lane.b32.xlu1 %v2809_v9, %s2919_s5  ;;  %v3292_v23 = vpop.permute.xlu0 %1055 }
 0xa08   :  { %vm1057_vm8 = vcmp.eq.s32.totalorder %v3292_v23, 1 }
 0xa0a   :  { %v2811_v13 = vpop.eup %2810 }
 0xa0b   :  { %994 = vrot.lane.b32.xlu1 %v2811_v13, %s2919_s5 }
 0xa0f   :  { %1037 = vperm.xlu1 %2730, %v1035_v50  }
 0xa13   :  { %1097 = vrot.lane.b32.xlu1 %v1096_v15, %s2921_s26 }
 0xa17   :  { %1084 = vrot.lane.b32.xlu1 %v1083_v52, %s2921_s26 }
 0xa79   :  { %v1030_v55 = vpop.permute.xlu1 %1029 }
 0xa7a   :  { %v1032_v17 = vmul.f32 %v2805_v42, %v1030_v55 }
 0xa7c   :  { %v1065_v18 = vrot.slane %v1032_v17, %v3047_v22 }
 0xa7d   :  { %v995_v19 = vpop.permute.xlu1 %994 }
 0xa7e   :  { %v997_v3 = vmul.f32 %v2807_v49, %v995_v19  ;;  %1066 = vrot.lane.b32.xlu0 %v1065_v18, %s2920_s23 }
 0xa80   :  { %v1047_v20 = vrot.slane %v997_v3, %v3047_v22 }
 0xa82   :  { %1048 = vrot.lane.b32.xlu0 %v1047_v20, %s2920_s23 }
 0xa8a   :  { %v3290_v21 = vpop.permute.xlu1 %1037 }
 0xa8b   :  { %vm1039_vm9 = vcmp.eq.s32.totalorder %v3290_v21, 1  ;;  %v2741_v21 = vld [vmem:[%s3713_s6 + $0x10] sm:$0xff]  }
 0xa8e   :  { %v1098_v24 = vpop.permute.xlu1 %1097 }
 0xa8f   :  { %v3298_v25 = vsel %vm1057_vm8, %v1098_v24, %v3224_v62 }
 0xa90   :  { %v1242_v26 = vrot.slane %v3298_v25, %v3047_v22 }
 0xa92   :  { %v1085_v27 = vpop.permute.xlu1 %1084  ;;  %1243 = vrot.lane.b32.xlu1 %v1242_v26, %s2920_s23 }
 0xa93   :  { %v3307_v28 = vsel %vm1039_vm9, %v1085_v27, %v3233_v1 }
 0xa94   :  { %v1207_v29 = vrot.slane %v3307_v28, %v3047_v22 }
 0xa96   :  { %1208 = vrot.lane.b32.xlu1 %v1207_v29, %s2920_s23 }
 0xaf0   :  { %v3312_v62 = vpop.permute.xlu0 %1066 }
 0xaf1   :  { %v3318_v30 = vsel %vm1057_vm8, %v3312_v62, %v3244_v12 }
 0xaf2   :  { %v1148_v33 = vpack.c.bf16 %v3318_v30, %v3318_v30 }
 0xaf4   :  { %2632 = vmatmul.mubr.msk.bf16.vlgmr.msra.gmra.mxu0 %vm196_vm5, %v1148_v33  ;;  %v1049_v1 = vpop.permute.xlu0 %1048 }
 0xaf5   :  { %v1051_v35 = vsel %vm1039_vm9, %v1049_v1, 0.0  ;;  %v3328_v36 = vsel %vm1039_vm9, %v1049_v1, %v3254_v16  ;;  %2644 = vmatpush3.bf16.msra.mxu0 %v2996_v6  ;;  %2647 = vmatprep.mubr.msk.bf16.mxu0 %vm2917_vm1, %v2916_v4  ;;  %v1147_v6 = vld [vmem:[#allocation2 + $0xe] sm:$0x3] }
 0xaf6   :  { %1052 = vst.msk [vmem:[#allocation3 + $0x6] sm:$0x3] %vm362_vm7, %v1051_v35  ;;  %v1102_v12 = vpack.c.bf16 %v3328_v36, %v3328_v36  ;;  %2645 = vmatprep.subr.bf16.mxu0 %v2916_v4 }
 0xaf8   :  { %2624 = vmatmul.mubr.msk.bf16.vlgmr.msra.gmra.mxu1 %vm196_vm5, %v1102_v12 }
 0xaf9   :  { %2646 = vmatpush3.bf16.msra.mxu0 %v3011_v8  ;;  %2636 = vmatpush3.bf16.msra.mxu1 %v2990_v5 }
 0xafa   :  { %2637 = vmatprep.subr.bf16.mxu1 %v2916_v4  ;;  %2639 = vmatprep.mubr.msk.bf16.mxu1 %vm2917_vm1, %v2916_v4 }
 0xafb   :  { %2659 = vmatprep.subr.bf16.mxu0 %v2916_v4 }
 0xafd   :  { %2638 = vmatpush3.bf16.msra.mxu1 %v3004_v7 }
 0xafe   :  { %2651 = vmatprep.subr.bf16.mxu1 %v2916_v4 }
 0xb04   :  { %v1244_v15 = vpop.permute.xlu1 %1243 }
 0xb08   :  { %v1209_v18 = vpop.permute.xlu1 %1208 }
 0xbb4   :  { %v1186_v16 = vpop.f32.mrf.mxu0 }
 0xbb5   :  { %v1192_v38 = vadd.f32 %v1186_v16, %v1147_v6 }
 0xbb6   :  { %v2633_v39 = vpop.f32.mrf.mxu0 }
 0xbb7   :  { %2812 = vtanh.f32 %v1192_v38  ;;  %v2466_v43 = vmul.f32 -1.442695, %v1192_v38 }
 0xbb8   :  { %v1140_v8 = vpop.f32.mrf.mxu1  ;;  %v1189_v42 = vpop.f32.mrf.mxu0 }
 0xbb9   :  { %v1146_v5 = vadd.f32 %v1140_v8, %v1101_v41 }
 0xbba   :  { %v2625_v46 = vpop.f32.mrf.mxu1  ;;  %v2634_v48 = vpop.f32.mrf.mxu0 }
 0xbbb   :  { %2814 = vtanh.f32 %v1146_v5  ;;  %v2465_v54 = vmul.f32 -1.442695, %v1146_v5 }
 0xbbc   :  { %v1143_v49 = vpop.f32.mrf.mxu1  ;;  %2816 = vpow2.f32 %v2466_v43  ;;  %v1365_v43 = vld [vmem:[#allocation2 + $0xa] sm:$0x3] }
 0xbbd   :  { %2818 = vpow2.f32 %v2465_v54 }
 0xbbe   :  { %v2626_v51 = vpop.f32.mrf.mxu1 }
 0xbbf   :  { %v3407_v51 = vld [vmem:[%s3711_s4] sm:$0xff]  }
 0xbc4   :  { %v2813_v53 = vpop.eup %2812 }
 0xbc5   :  { %1248 = vrot.lane.b32.xlu0 %v2813_v53, %s2919_s5  ;;  %v3413_v53 = vld [vmem:[%s3710_s3 + $0x8] sm:$0xff]  }
 0xbc8   :  { %v2815_v7 = vpop.eup %2814 }
 0xbc9   :  { %1213 = vrot.lane.b32.xlu0 %v2815_v7, %s2919_s5  ;;  %v2817_v56 = vpop.eup %2816 }
 0xbca   :  { %v1231_v37 = vadd.f32 1.0, %v2817_v56  ;;  %v2819_v57 = vpop.eup %2818 }
 0xbcb   :  { %v1196_v58 = vadd.f32 1.0, %v2819_v57  ;;  %v1319_v57 = vld [vmem:[#allocation2 + $0x14] sm:$0x3] }
 0xbcc   :  { %2820 = vrcp.f32 %v1231_v37 }
 0xbcd   :  { %2822 = vrcp.f32 %v1196_v58 }
 0xbd9   :  { %v2821_v61 = vpop.eup %2820 }
 0xbda   :  { %v2823_v9 = vpop.eup %2822  ;;  %v1246_v52 = vmul.f32 %v2821_v61, %v1244_v15 }
 0xbdb   :  { %v1211_v19 = vmul.f32 %v2823_v9, %v1209_v18 }
 0xc37   :  { %v1249_v63 = vpop.permute.xlu0 %1248 }
 0xc38   :  { %v1251_v0 = vmul.f32 %v2821_v61, %v1249_v63 }
 0xc3a   :  { %1253 = vrot.lane.b32.xlu0 %v1251_v0, %s2920_s23 }
 0xc3b   :  { %v1214_v13 = vpop.permute.xlu0 %1213 }
 0xc3c   :  { %v1216_v50 = vmul.f32 %v2823_v9, %v1214_v13 }
 0xc3e   :  { %1218 = vrot.lane.b32.xlu0 %v1216_v50, %s2920_s23 }
 0xcac   :  { %v1254_v55 = vpop.permute.xlu0 %1253 }
 0xcad   :  { %v1256_v17 = vadd.f32 %v1254_v55, %v1246_v52 }
 0xcaf   :  { %2824 = vtanh.f32 %v1256_v17  ;;  %v1314_v12 = vrot.slane %v1256_v17, %v3047_v22 }
 0xcb0   :  { %v1219_v3 = vpop.permute.xlu0 %1218 }
 0xcb1   :  { %v1221_v20 = vadd.f32 %v1219_v3, %v1211_v19 }
 0xcb3   :  { %2826 = vtanh.f32 %v1221_v20  ;;  %v1301_v16 = vrot.slane %v1221_v20, %v3047_v22 }
 0xcbc   :  { %v2825_v24 = vpop.eup %2824 }
 0xcbd   :  { %1259 = vrot.lane.b32.xlu1 %v2825_v24, %s2919_s5 }
 0xcc0   :  { %v2827_v26 = vpop.eup %2826 }
 0xcc1   :  { %1224 = vrot.lane.b32.xlu0 %v2827_v26, %s2919_s5 }
 0xd2f   :  { %v1260_v27 = vpop.permute.xlu1 %1259 }
 0xd30   :  { %v1262_v29 = vmul.f32 %v2821_v61, %v1260_v27 }
 0xd32   :  { %v1283_v33 = vrot.slane %v1262_v29, %v3047_v22 }
 0xd33   :  { %v1225_v1 = vpop.permute.xlu0 %1224 }
 0xd34   :  { %v1227_v35 = vmul.f32 %v2823_v9, %v1225_v1  ;;  %1284 = vrot.lane.b32.xlu1 %v1283_v33, %s2920_s23 }
 0xd36   :  { %v1270_v6 = vrot.slane %v1227_v35, %v3047_v22 }
 0xd38   :  { %1315 = vrot.lane.b32.xlu1 %v1314_v12, %s2921_s26  ;;  %1271 = vrot.lane.b32.xlu0 %v1270_v6, %s2920_s23 }
 0xd3c   :  { %1302 = vrot.lane.b32.xlu1 %v1301_v16, %s2921_s26 }
 0xda6   :  { %v3360_v38 = vpop.permute.xlu1 %1284 }
 0xda7   :  { %v3366_v39 = vsel %vm1039_vm9, %v3360_v38, %v3318_v30  ;;  %v3387_v30 = vld [vmem:[%s3711_s4 + $0x8] sm:$0xff]   ;;  %v1287_v60 = vsel %vm1039_vm9, %v3360_v38, 0.0  ;;  %v2112_v38 = vand.u32 1, %v2108_v44 }
 0xda8   :  { %v1366_v41 = vpack.c.bf16 %v3366_v39, %v3366_v39 }
 0xdaa   :  { %2648 = vmatmul.mubr.msk.bf16.vlgmr.msra.gmra.mxu0 %vm196_vm5, %v1366_v41  ;;  %v1316_v8 = vpop.permute.xlu1 %1315  ;;  %v3371_v42 = vpop.permute.xlu0 %1271 }
 0xdab   :  { %v3376_v5 = vsel %vm1039_vm9, %v1316_v8, %v3298_v25  ;;  %v3382_v46 = vsel %vm1057_vm8, %v3371_v42, %v3328_v36  ;;  %2660 = vmatpush3.bf16.msra.mxu0 %v3387_v30  ;;  %2663 = vmatprep.mubr.msk.bf16.mxu0 %vm2917_vm1, %v2916_v4 }
 0xdac   :  { %v1460_v25 = vrot.slane %v3376_v5, %v3047_v22  ;;  %v1320_v48 = vpack.c.bf16 %v3382_v46, %v3382_v46  ;;  %2661 = vmatprep.subr.bf16.mxu0 %v2916_v4 }
 0xdae   :  { %1461 = vrot.lane.b32.xlu1 %v1460_v25, %s2920_s23  ;;  %v1303_v36 = vpop.permute.xlu1 %1302  ;;  %2640 = vmatmul.mubr.msk.bf16.vlgmr.msra.gmra.mxu1 %vm196_vm5, %v1320_v48 }
 0xdaf   :  { %v3402_v49 = vsel %vm1057_vm8, %v1303_v36, %v3307_v28  ;;  %2662 = vmatpush3.bf16.msra.mxu0 %v3407_v51  ;;  %2652 = vmatpush3.bf16.msra.mxu1 %v3413_v53  ;;  %v3426_v28 = vld [vmem:[%s3710_s3] sm:$0xff]  }
 0xdb0   :  { %v1425_v7 = vrot.slane %v3402_v49, %v3047_v22  ;;  %2653 = vmatprep.subr.bf16.mxu1 %v2916_v4  ;;  %2655 = vmatprep.mubr.msk.bf16.mxu1 %vm2917_vm1, %v2916_v4 }
 0xdb1   :  { %2675 = vmatprep.subr.bf16.mxu0 %v2916_v4 }
 0xdb2   :  { %1426 = vrot.lane.b32.xlu1 %v1425_v7, %s2920_s23 }
 0xdb3   :  { %2654 = vmatpush3.bf16.msra.mxu1 %v3426_v28 }
 0xdb4   :  { %2667 = vmatprep.subr.bf16.mxu1 %v2916_v4 }
 0xe20   :  { %v1462_v35 = vpop.permute.xlu1 %1461 }
 0xe24   :  { %v1427_v41 = vpop.permute.xlu1 %1426 }
 0xe6a   :  { %v1404_v54 = vpop.f32.mrf.mxu0 }
 0xe6b   :  { %v1410_v56 = vadd.f32 %v1404_v54, %v1365_v43 }
 0xe6c   :  { %v2649_v37 = vpop.f32.mrf.mxu0 }
 0xe6d   :  { %2828 = vtanh.f32 %v1410_v56  ;;  %v2470_v55 = vmul.f32 -1.442695, %v1410_v56 }
 0xe6e   :  { %v1358_v58 = vpop.f32.mrf.mxu1  ;;  %v1407_v61 = vpop.f32.mrf.mxu0 }
 0xe6f   :  { %v1364_v63 = vadd.f32 %v1358_v58, %v1319_v57 }
 0xe70   :  { %v2641_v0 = vpop.f32.mrf.mxu1  ;;  %v2650_v9 = vpop.f32.mrf.mxu0 }
 0xe71   :  { %2830 = vtanh.f32 %v1364_v63  ;;  %v2469_v17 = vmul.f32 -1.442695, %v1364_v63 }
 0xe72   :  { %v1361_v13 = vpop.f32.mrf.mxu1  ;;  %2832 = vpow2.f32 %v2470_v55 }
 0xe73   :  { %2834 = vpow2.f32 %v2469_v17 }
 0xe74   :  { %v2642_v50 = vpop.f32.mrf.mxu1 }
 0xe7a   :  { %v2829_v15 = vpop.eup %2828 }
 0xe7b   :  { %1466 = vrot.lane.b32.xlu0 %v2829_v15, %s2919_s5 }
 0xe7e   :  { %v2831_v52 = vpop.eup %2830 }
 0xe7f   :  { %1431 = vrot.lane.b32.xlu0 %v2831_v52, %s2919_s5  ;;  %v2833_v18 = vpop.eup %2832 }
 0xe80   :  { %v1449_v19 = vadd.f32 1.0, %v2833_v18  ;;  %v2835_v3 = vpop.eup %2834 }
 0xe81   :  { %v1414_v20 = vadd.f32 1.0, %v2835_v3 }
 0xe82   :  { %2836 = vrcp.f32 %v1449_v19  ;;  %v1537_v19 = vld [vmem:[#allocation2 + $0x18] sm:$0x3] }
 0xe83   :  { %2838 = vrcp.f32 %v1414_v20 }
 0xe8f   :  { %v2837_v24 = vpop.eup %2836 }
 0xe90   :  { %v2839_v29 = vpop.eup %2838  ;;  %v1464_v12 = vmul.f32 %v2837_v24, %v1462_v35 }
 0xe91   :  { %v1429_v8 = vmul.f32 %v2839_v29, %v1427_v41 }
 0xeed   :  { %v1467_v26 = vpop.permute.xlu0 %1466 }
 0xeee   :  { %v1469_v27 = vmul.f32 %v2837_v24, %v1467_v26 }
 0xef0   :  { %1471 = vrot.lane.b32.xlu0 %v1469_v27, %s2920_s23 }
 0xef1   :  { %v1432_v33 = vpop.permute.xlu0 %1431 }
 0xef2   :  { %v1434_v1 = vmul.f32 %v2839_v29, %v1432_v33 }
 0xef4   :  { %1436 = vrot.lane.b32.xlu0 %v1434_v1, %s2920_s23 }
 0xf62   :  { %v1472_v6 = vpop.permute.xlu0 %1471 }
 0xf63   :  { %v1474_v16 = vadd.f32 %v1472_v6, %v1464_v12 }
 0xf65   :  { %2840 = vtanh.f32 %v1474_v16  ;;  %v1532_v58 = vrot.slane %v1474_v16, %v3047_v22 }
 0xf66   :  { %v1437_v25 = vpop.permute.xlu0 %1436 }
 0xf67   :  { %v1439_v48 = vadd.f32 %v1437_v25, %v1429_v8 }
 0xf69   :  { %2842 = vtanh.f32 %v1439_v48  ;;  %v1519_v63 = vrot.slane %v1439_v48, %v3047_v22 }
 0xf72   :  { %v2841_v36 = vpop.eup %2840 }
 0xf73   :  { %1477 = vrot.lane.b32.xlu1 %v2841_v36, %s2919_s5 }
 0xf76   :  { %v2843_v7 = vpop.eup %2842 }
 0xf77   :  { %1442 = vrot.lane.b32.xlu0 %v2843_v7, %s2919_s5 }
 0xfe5   :  { %v1478_v43 = vpop.permute.xlu1 %1477 }
 0xfe6   :  { %v1480_v54 = vmul.f32 %v2837_v24, %v1478_v43 }
 0xfe8   :  { %v1501_v56 = vrot.slane %v1480_v54, %v3047_v22 }
 0xfe9   :  { %v1443_v37 = vpop.permute.xlu0 %1442 }
 0xfea   :  { %v1445_v57 = vmul.f32 %v2839_v29, %v1443_v37  ;;  %1502 = vrot.lane.b32.xlu1 %v1501_v56, %s2920_s23 }
 0xfec   :  { %v1488_v61 = vrot.slane %v1445_v57, %v3047_v22 }
 0xfee   :  { %1533 = vrot.lane.b32.xlu1 %v1532_v58, %s2921_s26  ;;  %1489 = vrot.lane.b32.xlu0 %v1488_v61, %s2920_s23 }
 0xff2   :  { %1520 = vrot.lane.b32.xlu1 %v1519_v63, %s2921_s26 }
0x105c   :  { %v3444_v0 = vpop.permute.xlu1 %1502 }
0x105d   :  { %v3450_v9 = vsel %vm809_vm15, %v3444_v0, %v3366_v39 }
0x105e   :  { %v1584_v13 = vpack.c.bf16 %v3450_v9, %v3450_v9 }
0x1060   :  { %2664 = vmatmul.mubr.msk.bf16.vlgmr.msra.gmra.mxu0 %vm196_vm5, %v1584_v13  ;;  %v1534_v50 = vpop.permute.xlu1 %1533  ;;  %v3455_v15 = vpop.permute.xlu0 %1489 }
0x1061   :  { %v3460_v52 = vsel %vm809_vm15, %v1534_v50, %v3376_v5  ;;  %v3466_v55 = vsel %vm827_vm14, %v3455_v15, %v3382_v46  ;;  %2676 = vmatpush3.bf16.msra.mxu0 %v3387_v30  ;;  %2679 = vmatprep.mubr.msk.bf16.mxu0 %vm2917_vm1, %v2916_v4 }
0x1062   :  { %v1678_v39 = vrot.slane %v3460_v52, %v3047_v22  ;;  %v1538_v17 = vpack.c.bf16 %v3466_v55, %v3466_v55  ;;  %2677 = vmatprep.subr.bf16.mxu0 %v2916_v4 }
0x1064   :  { %1679 = vrot.lane.b32.xlu1 %v1678_v39, %s2920_s23  ;;  %v1521_v5 = vpop.permute.xlu1 %1520  ;;  %2656 = vmatmul.mubr.msk.bf16.vlgmr.msra.gmra.mxu1 %vm196_vm5, %v1538_v17 }
0x1065   :  { %v3481_v46 = vsel %vm827_vm14, %v1521_v5, %v3402_v49  ;;  %2678 = vmatpush3.bf16.msra.mxu0 %v3407_v51  ;;  %2668 = vmatpush3.bf16.msra.mxu1 %v3413_v53  ;;  %v1583_v49 = vld [vmem:[#allocation2 + $0x6] sm:$0x3] }
0x1066   :  { %v1643_v30 = vrot.slane %v3481_v46, %v3047_v22  ;;  %2669 = vmatprep.subr.bf16.mxu1 %v2916_v4  ;;  %2671 = vmatprep.mubr.msk.bf16.mxu1 %vm2917_vm1, %v2916_v4 }
0x1067   :  { %2695 = vmatprep.subr.bf16.mxu0 %v2916_v4 }
0x1068   :  { %1644 = vrot.lane.b32.xlu1 %v1643_v30, %s2920_s23 }
0x1069   :  { %2670 = vmatpush3.bf16.msra.mxu1 %v3426_v28 }
0x106a   :  { %2683 = vmatprep.subr.bf16.mxu1 %v2916_v4 }
0x10d6   :  { %v1680_v56 = vpop.permute.xlu1 %1679 }
0x10da   :  { %v1645_v61 = vpop.permute.xlu1 %1644 }
0x1120   :  { %v1622_v51 = vpop.f32.mrf.mxu0 }
0x1121   :  { %v1628_v18 = vadd.f32 %v1622_v51, %v1583_v49 }
0x1122   :  { %v2665_v53 = vpop.f32.mrf.mxu0 }
0x1123   :  { %2844 = vtanh.f32 %v1628_v18  ;;  %v2474_v35 = vmul.f32 -1.442695, %v1628_v18 }
0x1124   :  { %v1576_v3 = vpop.f32.mrf.mxu1  ;;  %v1625_v20 = vpop.f32.mrf.mxu0 }
0x1125   :  { %v1582_v24 = vadd.f32 %v1576_v3, %v1537_v19 }
0x1126   :  { %v2657_v26 = vpop.f32.mrf.mxu1  ;;  %v2666_v27 = vpop.f32.mrf.mxu0 }
0x1127   :  { %2846 = vtanh.f32 %v1582_v24  ;;  %v2473_v12 = vmul.f32 -1.442695, %v1582_v24 }
0x1128   :  { %v1579_v29 = vpop.f32.mrf.mxu1  ;;  %2848 = vpow2.f32 %v2474_v35 }
0x1129   :  { %2850 = vpow2.f32 %v2473_v12  ;;  %v1801_v12 = vld [vmem:[#allocation2 + $0x2] sm:$0x3] }
0x112a   :  { %v2658_v33 = vpop.f32.mrf.mxu1 }
0x1130   :  { %v2845_v1 = vpop.eup %2844 }
0x1131   :  { %1684 = vrot.lane.b32.xlu0 %v2845_v1, %s2919_s5 }
0x1134   :  { %v2847_v28 = vpop.eup %2846 }
0x1135   :  { %1649 = vrot.lane.b32.xlu0 %v2847_v28, %s2919_s5  ;;  %v2849_v6 = vpop.eup %2848 }
0x1136   :  { %v1667_v16 = vadd.f32 1.0, %v2849_v6  ;;  %v2851_v41 = vpop.eup %2850 }
0x1137   :  { %v1632_v8 = vadd.f32 1.0, %v2851_v41 }
0x1138   :  { %2852 = vrcp.f32 %v1667_v16 }
0x1139   :  { %2854 = vrcp.f32 %v1632_v8  ;;  %v1755_v8 = vld [vmem:[#allocation2 + $0x1c] sm:$0x3] }
0x1145   :  { %v2853_v25 = vpop.eup %2852 }
0x1146   :  { %v2855_v7 = vpop.eup %2854  ;;  %v1682_v37 = vmul.f32 %v2853_v25, %v1680_v56 }
0x1147   :  { %v1647_v63 = vmul.f32 %v2855_v7, %v1645_v61 }
0x11a3   :  { %v1685_v48 = vpop.permute.xlu0 %1684 }
0x11a4   :  { %v1687_v36 = vmul.f32 %v2853_v25, %v1685_v48 }
0x11a6   :  { %1689 = vrot.lane.b32.xlu0 %v1687_v36, %s2920_s23 }
0x11a7   :  { %v1650_v43 = vpop.permute.xlu0 %1649 }
0x11a8   :  { %v1652_v54 = vmul.f32 %v2855_v7, %v1650_v43 }
0x11aa   :  { %1654 = vrot.lane.b32.xlu0 %v1652_v54, %s2920_s23 }
0x1218   :  { %v1690_v57 = vpop.permute.xlu0 %1689 }
0x1219   :  { %v1692_v58 = vadd.f32 %v1690_v57, %v1682_v37 }
0x121b   :  { %2856 = vtanh.f32 %v1692_v58  ;;  %v1750_v53 = vrot.slane %v1692_v58, %v3047_v22 }
0x121c   :  { %v1655_v13 = vpop.permute.xlu0 %1654 }
0x121d   :  { %v1657_v50 = vadd.f32 %v1655_v13, %v1647_v63 }
0x121f   :  { %2858 = vtanh.f32 %v1657_v50  ;;  %v1737_v3 = vrot.slane %v1657_v50, %v3047_v22 }
0x1228   :  { %v2857_v39 = vpop.eup %2856 }
0x1229   :  { %1695 = vrot.lane.b32.xlu1 %v2857_v39, %s2919_s5 }
0x122c   :  { %v2859_v17 = vpop.eup %2858 }
0x122d   :  { %1660 = vrot.lane.b32.xlu0 %v2859_v17, %s2919_s5 }
0x129b   :  { %v1696_v5 = vpop.permute.xlu1 %1695 }
0x129c   :  { %v1698_v30 = vmul.f32 %v2853_v25, %v1696_v5 }
0x129e   :  { %v1719_v49 = vrot.slane %v1698_v30, %v3047_v22 }
0x129f   :  { %v1661_v51 = vpop.permute.xlu0 %1660 }
0x12a0   :  { %v1663_v18 = vmul.f32 %v2855_v7, %v1661_v51  ;;  %1720 = vrot.lane.b32.xlu1 %v1719_v49, %s2920_s23 }
0x12a2   :  { %v1706_v19 = vrot.slane %v1663_v18, %v3047_v22 }
0x12a4   :  { %1751 = vrot.lane.b32.xlu1 %v1750_v53, %s2921_s26  ;;  %1707 = vrot.lane.b32.xlu0 %v1706_v19, %s2920_s23 }
0x12a8   :  { %1738 = vrot.lane.b32.xlu1 %v1737_v3, %s2921_s26 }
0x1312   :  { %v3508_v20 = vpop.permute.xlu1 %1720 }
0x1313   :  { %v1742_v24 = vsel %vm579_vm11, %v3508_v20, %v3450_v9 }
0x1314   :  { %v1802_v26 = vpack.c.bf16 %v1742_v24, %v1742_v24 }
0x1316   :  { %2680 = vmatmul.mubr.msk.bf16.vlgmr.msra.gmra.mxu0 %vm196_vm5, %v1802_v26  ;;  %v1752_v27 = vpop.permute.xlu1 %1751  ;;  %v3515_v29 = vpop.permute.xlu0 %1707 }
0x1317   :  { %v1754_v33 = vsel %vm579_vm11, %v1752_v27, %v3460_v52  ;;  %v1729_v1 = vsel %vm597_vm10, %v3515_v29, %v3466_v55  ;;  %2703 = vmatprep.mubr.msk.bf16.mxu0 %vm2917_vm1, %v2916_v4 }
0x1318   :  { %v1896_v9 = vrot.slane %v1754_v33, %v3047_v22  ;;  %v1756_v28 = vpack.c.bf16 %v1729_v1, %v1729_v1 }
0x131a   :  { %1897 = vrot.lane.b32.xlu1 %v1896_v9, %s2920_s23  ;;  %v1739_v35 = vpop.permute.xlu1 %1738  ;;  %2672 = vmatmul.mubr.msk.bf16.vlgmr.msra.gmra.mxu1 %vm196_vm5, %v1756_v28  ;;  %v839_v28 = vsel %vm827_vm14, %v3238_v47, 0.0  ;;  %vm385_vm5 = vcmask 517376  }
0x131b   :  { %v1741_v52 = vsel %vm597_vm10, %v1739_v35, %v3481_v46  ;;  %2691 = vmatprep.mubr.msk.bf16.mxu1 %vm2917_vm1, %v2916_v4 }
0x131c   :  { %v1861_v55 = vrot.slane %v1741_v52, %v3047_v22 }
0x131e   :  { %1862 = vrot.lane.b32.xlu1 %v1861_v55, %s2920_s23 }
0x138c   :  { %v1898_v18 = vpop.permute.xlu1 %1897 }
0x1390   :  { %v1863_v24 = vpop.permute.xlu1 %1862 }
0x13d6   :  { %v1840_v6 = vpop.f32.mrf.mxu0 }
0x13d7   :  { %v1846_v16 = vadd.f32 %v1840_v6, %v1801_v12 }
0x13d8   :  { %v2681_v41 = vpop.f32.mrf.mxu0 }
0x13d9   :  { %2860 = vtanh.f32 %v1846_v16  ;;  %v2478_v57 = vmul.f32 -1.442695, %v1846_v16  ;;  %v2111_v16 = vand.u32 1, %v3035_v10 }
0x13da   :  { %v1794_v25 = vpop.f32.mrf.mxu1  ;;  %v1843_v48 = vpop.f32.mrf.mxu0 }
0x13db   :  { %v1800_v36 = vadd.f32 %v1794_v25, %v1755_v8  ;;  %v2892_v8 = vld [vmem:[%s3707_s0] sm:$0x3]  ;;  %vm3563_vm12 = vcmp.eq.s32.totalorder %v2111_v16, 0  ;;  %v1069_v48 = vsel %vm1057_vm8, %v3312_v62, 0.0  ;;  %vm3583_vm13 = vcmp.eq.s32.totalorder %v2111_v16, 1 }
0x13dc   :  { %v2673_v7 = vpop.f32.mrf.mxu1  ;;  %v2682_v43 = vpop.f32.mrf.mxu0  ;;  %v2118_v25 = vrot.slane %v2892_v8, %v42_v11  ;;  %v1505_v11 = vsel %vm809_vm15, %v3444_v0, 0.0  ;;  %vm3622_vm15 = vcmp.eq.s32.totalorder %v2112_v38, 1 }
0x13dd   :  { %2862 = vtanh.f32 %v1800_v36  ;;  %v2477_v58 = vmul.f32 -1.442695, %v1800_v36  ;;  %v1492_v7 = vsel %vm827_vm14, %v3455_v15, 0.0  ;;  %v1723_v15 = vsel %vm579_vm11, %v3508_v20, 0.0  ;;  %v2740_v43 = vld [vmem:[%s3713_s6 + $0x18] sm:$0xff]   ;;  %v2742_v20 = vld [vmem:[%s3713_s6 + $0x8] sm:$0xff]  }
0x13de   :  { %v1797_v46 = vpop.f32.mrf.mxu1  ;;  %2864 = vpow2.f32 %v2478_v57  ;;  %2684 = vmatpush3.bf16.msra.mxu1 %v2740_v43  ;;  %vm3612_vm11 = vcmp.eq.s32.totalorder %v2112_v38, 0  ;;  %v2110_v57 = vshra.s32 %v2108_v44, 1 }
0x13df   :  { %2866 = vpow2.f32 %v2477_v58  ;;  %2685 = vmatprep.subr.bf16.mxu1 %v2916_v4 }
0x13e0   :  { %v2674_v54 = vpop.f32.mrf.mxu1 }
0x13e2   :  { %2686 = vmatpush3.bf16.msra.mxu1 %v2741_v21 }
0x13e3   :  { %2687 = vmatprep.subr.bf16.mxu1 %v2916_v4 }
0x13e6   :  { %v2861_v56 = vpop.eup %2860  ;;  %2688 = vmatpush3.bf16.msra.mxu1 %v2742_v20 }
0x13e7   :  { %1902 = vrot.lane.b32.xlu0 %v2861_v56, %s2919_s5  ;;  %v2743_v56 = vld [vmem:[%s3713_s6] sm:$0xff]   ;;  %2689 = vmatprep.subr.bf16.mxu1 %v2916_v4 }
0x13ea   :  { %v2863_v37 = vpop.eup %2862  ;;  %2690 = vmatpush3.bf16.msra.mxu1 %v2743_v56 }
0x13eb   :  { %1867 = vrot.lane.b32.xlu0 %v2863_v37, %s2919_s5  ;;  %v2865_v61 = vpop.eup %2864  ;;  %v2120_v37 = vsel %vm3612_vm11, %v2118_v25, 0  ;;  %2707 = vmatprep.subr.mxu1 %v2916_v4 }
0x13ec   :  { %v1885_v63 = vadd.f32 1.0, %v2865_v61  ;;  %v2867_v13 = vpop.eup %2866 }
0x13ed   :  { %v1850_v50 = vadd.f32 1.0, %v2867_v13 }
0x13ee   :  { %2868 = vrcp.f32 %v1885_v63 }
0x13ef   :  { %2870 = vrcp.f32 %v1850_v50 }
0x13fb   :  { %v2869_v39 = vpop.eup %2868 }
0x13fc   :  { %v2871_v30 = vpop.eup %2870  ;;  %v1900_v53 = vmul.f32 %v2869_v39, %v1898_v18  ;;  %v2745_v18 = vld [vmem:[%s3714_s7 + $0x10] sm:$0xff]  }
0x13fd   :  { %v1865_v26 = vmul.f32 %v2871_v30, %v1863_v24 }
0x1459   :  { %v1903_v17 = vpop.permute.xlu0 %1902 }
0x145a   :  { %v1905_v5 = vmul.f32 %v2869_v39, %v1903_v17  ;;  %v1710_v17 = vsel %vm597_vm10, %v3515_v29, 0.0 }
0x145c   :  { %1907 = vrot.lane.b32.xlu0 %v1905_v5, %s2920_s23 }
0x145d   :  { %v1868_v49 = vpop.permute.xlu0 %1867 }
0x145e   :  { %v1870_v51 = vmul.f32 %v2871_v30, %v1868_v49 }
0x1460   :  { %1872 = vrot.lane.b32.xlu0 %v1870_v51, %s2920_s23 }
0x14ce   :  { %v1908_v19 = vpop.permute.xlu0 %1907 }
0x14cf   :  { %v1910_v3 = vadd.f32 %v1908_v19, %v1900_v53  ;;  %v2746_v53 = vld [vmem:[%s3714_s7 + $0x8] sm:$0xff]   ;;  %v2747_v19 = vld [vmem:[%s3714_s7] sm:$0xff]  }
0x14d1   :  { %2872 = vtanh.f32 %v1910_v3 }
0x14d2   :  { %v1873_v27 = vpop.permute.xlu0 %1872 }
0x14d3   :  { %v1875_v33 = vadd.f32 %v1873_v27, %v1865_v26 }
0x14d5   :  { %2874 = vtanh.f32 %v1875_v33 }
0x14de   :  { %v2873_v1 = vpop.eup %2872 }
0x14df   :  { %1913 = vrot.lane.b32.xlu1 %v2873_v1, %s2919_s5 }
0x14e2   :  { %v2875_v9 = vpop.eup %2874 }
0x14e3   :  { %1878 = vrot.lane.b32.xlu0 %v2875_v9, %s2919_s5 }
0x14e7   :  { %382 = vrot.lane.b32.xlu0 %v3083_v34, %s2920_s23  ;;  %v609_v34 = vsel %vm597_vm10, %v3164_v40, 0.0  ;;  %v2126_v40 = vrot.slane %v2892_v8, %v46_v14  ;;  %v2119_v14 = vsel %vm3563_vm12, %v2118_v25, 0 }
0x14e9   :  { %v2127_v0 = vsel %vm3583_vm13, %v2126_v40, %v2119_v14  ;;  %v2128_v58 = vsel %vm3622_vm15, %v2126_v40, %v2120_v37 }
0x14ea   :  { %vm2129_vm14 = vcmp.lt.s32.totalorder %v2109_v59, %v2127_v0  ;;  %vm2130_vm2 = vcmp.lt.s32.totalorder %v2110_v57, %v2128_v58 }
0x14eb   :  { %841 = vrot.lane.b32.xlu0 %v839_v28, %s2920_s23  ;;  %v2131_v46 = vsel %vm2129_vm14, 1, %v2915_v2  ;;  %v2132_v13 = vsel %vm2130_vm2, 1, %v2915_v2  ;;  %v1274_v2 = vsel %vm1057_vm8, %v3371_v42, 0.0  ;;  %v2744_v42 = vld [vmem:[%s3714_s7 + $0x18] sm:$0xff]  }
0x14ec   :  { %2696 = vmatpush3.bf16.msra.mxu0 %v2744_v42 }
0x14ed   :  { %2697 = vmatprep.subr.bf16.mxu0 %v2916_v4 }
0x14f0   :  { %2698 = vmatpush3.bf16.msra.mxu0 %v2745_v18 }
0x14f1   :  { %2699 = vmatprep.subr.bf16.mxu0 %v2916_v4 }
0x14f4   :  { %2700 = vmatpush3.bf16.msra.mxu0 %v2746_v53 }
0x14f5   :  { %2701 = vmatprep.subr.bf16.mxu0 %v2916_v4 }
0x14f8   :  { %2702 = vmatpush3.bf16.msra.mxu0 %v2747_v19 }
0x14f9   :  { %2714 = vmatprep.subr.mxu0 %v2916_v4 }
0x1551   :  { %v1914_v35 = vpop.permute.xlu1 %1913 }
0x1552   :  { %v1916_v52 = vmul.f32 %v2869_v39, %v1914_v35 }
0x1554   :  { %v1937_v55 = vrot.slane %v1916_v52, %v3047_v22 }
0x1555   :  { %v1879_v12 = vpop.permute.xlu0 %1878 }
0x1556   :  { %v1881_v6 = vmul.f32 %v2871_v30, %v1879_v12  ;;  %1938 = vrot.lane.b32.xlu1 %v1937_v55, %s2920_s23 }
0x1558   :  { %v1924_v41 = vrot.slane %v1881_v6, %v3047_v22 }
0x1559   :  { %v383_v47 = vpop.permute.xlu0 %382 }
0x155a   :  { %386 = vst.msk [vmem:[#allocation3 + $0xe] sm:$0x3] %vm385_vm5, %v383_v47  ;;  %611 = vrot.lane.b32.xlu1 %v609_v34, %s2920_s23  ;;  %1925 = vrot.lane.b32.xlu0 %v1924_v41, %s2920_s23 }
0x155d   :  { %v842_v36 = vpop.permute.xlu0 %841 }
0x155e   :  { %844 = vst.msk [vmem:[#allocation3 + $0xa] sm:$0x3] %vm385_vm5, %v842_v36  ;;  %1071 = vrot.lane.b32.xlu1 %v1069_v48, %s2920_s23  ;;  %1507 = vrot.lane.b32.xlu0 %v1505_v11, %s2920_s23 }
0x155f   :  { %1493 = vst.msk [vmem:[#allocation3 + $0xa] sm:$0x3] %vm362_vm7, %v1492_v7 }
0x1562   :  { %1289 = vrot.lane.b32.xlu1 %v1287_v60, %s2920_s23 }
0x1566   :  { %1725 = vrot.lane.b32.xlu1 %v1723_v15, %s2920_s23 }
0x156a   :  { %2134 = vperm.xlu1 %2730, %v2131_v46  }
0x15c8   :  { %v1939_v61 = vpop.permute.xlu1 %1938 }
0x15c9   :  { %v1941_v63 = vsel %vm349_vm6, %v1939_v61, 0.0 }
0x15ca   :  { %1943 = vrot.lane.b32.xlu0 %v1941_v63, %s2920_s23 }
0x15cc   :  { %v612_v50 = vpop.permute.xlu1 %611  ;;  %v1926_v39 = vpop.permute.xlu0 %1925 }
0x15cd   :  { %614 = vst.msk [vmem:[#allocation3 + $0xc] sm:$0x3] %vm385_vm5, %v612_v50  ;;  %v1928_v5 = vsel %vm368_vm4, %v1926_v39, 0.0  ;;  %vm1982_vm4 = vcmask 523264  }
0x15ce   :  { %1711 = vst.msk [vmem:[#allocation3 + $0xc] sm:$0x3] %vm362_vm7, %v1710_v17  ;;  %1929 = vst.msk [vmem:[#allocation3 + $0xe] sm:$0x3] %vm362_vm7, %v1928_v5  ;;  %2137 = vperm.xlu0 %2731, %v2132_v13  }
0x15d0   :  { %v1072_v32 = vpop.permute.xlu1 %1071  ;;  %v1508_v30 = vpop.permute.xlu0 %1507 }
0x15d1   :  { %1074 = vst.msk [vmem:[#allocation3 + $0x8] sm:$0x3] %vm385_vm5, %v1072_v32  ;;  %1510 = vst.msk [vmem:[#allocation3 + $0x4] sm:$0x3] %vm385_vm5, %v1508_v30 }
0x15d2   :  { %1275 = vst.msk [vmem:[#allocation3 + $0x8] sm:$0x3] %vm362_vm7, %v1274_v2  ;;  %vm2143_vm7 = vcmask 31744  }
0x15d4   :  { %v1290_v45 = vpop.permute.xlu1 %1289 }
0x15d5   :  { %1292 = vst.msk [vmem:[#allocation3 + $0x6] sm:$0x3] %vm385_vm5, %v1290_v45 }
0x15d8   :  { %v1726_v31 = vpop.permute.xlu1 %1725 }
0x15d9   :  { %1728 = vst.msk [vmem:[#allocation3 + $0x2] sm:$0x3] %vm385_vm5, %v1726_v31  ;;  %v1948_v51 = vld [vmem:[#allocation3 + $0x8] sm:$0xff] }
0x15e5   :  { %v2135_v28 = vpop.permute.xlu1 %2134 }
0x15e6   :  { %vm2139_vm6 = vcmp.eq.s32.totalorder %v2135_v28, 1 }
0x163c   :  { %v1944_v29 = vpop.permute.xlu0 %1943 }
0x163d   :  { %1946 = vst.msk [vmem:[#allocation3] sm:$0x3] %vm385_vm5, %v1944_v29 }
0x1644   :  { %v1947_v49 = vld [vmem:[#allocation3] sm:$0xff] }
0x1645   :  { %v1949_v23 = vpack.c.bf16 %v1948_v51, %v1947_v49 }
0x1647   :  { %2692 = vmatmul.mubr.msk.bf16.vlgmr.msra.gmra.mxu1 %vm1982_vm4, %v1949_v23 }
0x1648   :  { %2708 = vmatpush3.msra.mxu1 %v1948_v51  ;;  %2711 = vmatprep.mubr.msk.f32.mxu1 %vm2917_vm1, %v2916_v4 }
0x1649   :  { %2709 = vmatprep.subr.mxu1 %v2916_v4  ;;  %v2138_v52 = vpop.permute.xlu0 %2137 }
0x164a   :  { %2710 = vmatpush3.msra.mxu1 %v1947_v49  ;;  %vm2140_vm10 = vcmp.eq.s32.totalorder %v2138_v52, 1 }
0x1707   :  { %v2020_v3 = vpop.f32.mrf.mxu1 }
0x1708   :  { %2876 = vtanh.f32 %v2020_v3 }
0x1709   :  { %v2693_v24 = vpop.f32.mrf.mxu1 }
0x170b   :  { %v2023_v26 = vpop.f32.mrf.mxu1 }
0x170c   :  { %2878 = vtanh.f32 %v2023_v26 }
0x170d   :  { %v2694_v27 = vpop.f32.mrf.mxu1 }
0x1715   :  { %v2877_v33 = vpop.eup %2876 }
0x1719   :  { %v2879_v1 = vpop.eup %2878 }
0x171a   :  { %v2029_v9 = vpack.c.bf16 %v2879_v1, %v2877_v33 }
0x171c   :  { %2704 = vmatmul.mubr.msk.bf16.vlgmr.msra.gmra.mxu0 %vm1982_vm4, %v2029_v9 }
0x171d   :  { %2715 = vmatpush3.msra.mxu0 %v1948_v51  ;;  %2718 = vmatprep.mubr.msk.f32.mxu0 %vm2917_vm1, %v2916_v4  ;;  %vm2284_vm1 = vcmask 519168  }
0x171e   :  { %2716 = vmatprep.subr.mxu0 %v2916_v4 }
0x171f   :  { %2717 = vmatpush3.msra.mxu0 %v1947_v49 }
0x17dc   :  { %v2099_v35 = vpop.f32.mrf.mxu0 }
0x17dd   :  { %v2141_v12 = vsel %vm2139_vm6, %v2099_v35, -1e+30 }
0x17de   :  { %v2705_v55 = vpop.f32.mrf.mxu0  ;;  %v2144_v41 = vsel %vm2143_vm7, %v2141_v12, -inf }
0x17e0   :  { %v2102_v6 = vpop.f32.mrf.mxu0 }
0x17e1   :  { %v2142_v16 = vsel %vm2140_vm10, %v2102_v6, -1e+30 }
0x17e2   :  { %v2145_v34 = vsel %vm2143_vm7, %v2142_v16, -inf  ;;  %v2706_v47 = vpop.f32.mrf.mxu0 }
0x17e3   :  { %v2146_v8 = vmax.f32 %v2144_v41, %v2145_v34 }
0x17e5   :  { %v2147_v4 = vrot.slane %v2146_v8, 4 }
0x17e7   :  { %v2148_v25 = vmax.f32 %v2146_v8, %v2147_v4 }
0x17e9   :  { %v2149_v40 = vrot.slane %v2148_v25, 2 }
0x17eb   :  { %v2150_v48 = vmax.f32 %v2148_v25, %v2149_v40 }
0x17ed   :  { %v2151_v11 = vrot.slane %v2150_v48, 1 }
0x17ef   :  { %v2152_v36 = vmax.f32 %v2150_v48, %v2151_v11 }
0x17f1   :  { %v2153_v7 = vsub.f32 %v2141_v12, %v2152_v36  ;;  %v2154_v14 = vsub.f32 %v2142_v16, %v2152_v36 }
0x17f3   :  { %v2155_v59 = vmul.f32 1.442695, %v2153_v7  ;;  %v2157_v60 = vmul.f32 1.442695, %v2154_v14 }
0x17f5   :  { %2880 = vpow2.f32 %v2155_v59 }
0x17f6   :  { %2882 = vpow2.f32 %v2157_v60 }
0x1802   :  { %v2881_v0 = vpop.eup %2880 }
0x1803   :  { %v2883_v15 = vpop.eup %2882  ;;  %v2159_v43 = vsel %vm2139_vm6, %v2881_v0, 0.0 }
0x1804   :  { %v2160_v46 = vsel %vm2140_vm10, %v2883_v15, 0.0  ;;  %v2292_v21 = vsel %vm3583_vm13, %v2159_v43, 0.0  ;;  %v2165_v44 = vsel %vm3563_vm12, %v2159_v43, 0.0 }
0x1805   :  { %v2293_v38 = vsel %vm3622_vm15, %v2160_v46, 0.0  ;;  %v2294_v20 = vsel %vm2143_vm7, %v2292_v21, 0.0  ;;  %v2166_v56 = vsel %vm3612_vm11, %v2160_v46, 0.0  ;;  %v2167_v37 = vsel %vm2143_vm7, %v2165_v44, 0.0 }
0x1806   :  { %v2295_v57 = vsel %vm2143_vm7, %v2293_v38, 0.0  ;;  %v2168_v58 = vsel %vm2143_vm7, %v2166_v56, 0.0 }
0x1807   :  { %v2296_v61 = vadd.f32 %v2295_v57, %v2294_v20  ;;  %v2169_v62 = vadd.f32 %v2168_v58, %v2167_v37 }
0x1809   :  { %v2297_v63 = vrot.slane %v2296_v61, 4  ;;  %v2170_v13 = vrot.slane %v2169_v62, 4 }
0x180b   :  { %v2298_v22 = vadd.f32 %v2297_v63, %v2296_v61  ;;  %v2171_v50 = vadd.f32 %v2170_v13, %v2169_v62 }
0x180d   :  { %v2299_v39 = vrot.slane %v2298_v22, 2  ;;  %v2172_v10 = vrot.slane %v2171_v50, 2 }
0x180f   :  { %v2300_v17 = vadd.f32 %v2299_v39, %v2298_v22  ;;  %v2173_v5 = vadd.f32 %v2172_v10, %v2171_v50 }
0x1811   :  { %v2301_v32 = vrot.slane %v2300_v17, 1  ;;  %v2174_v30 = vrot.slane %v2173_v5, 1 }
0x1813   :  { %v2302_v54 = vadd.f32 %v2301_v32, %v2300_v17  ;;  %v2175_v2 = vadd.f32 %v2174_v30, %v2173_v5 }
0x1815   :  { %2884 = vrcp.f32 %v2302_v54 }
0x1816   :  { %2886 = vrcp.f32 %v2175_v2 }
0x1822   :  { %v2885_v45 = vpop.eup %2884 }
0x1823   :  { %v2887_v31 = vpop.eup %2886  ;;  %v2304_v29 = vmul.f32 %v2885_v45, %v2292_v21  ;;  %v2305_v49 = vmul.f32 %v2885_v45, %v2293_v38 }
0x1824   :  { %v2177_v51 = vmul.f32 %v2887_v31, %v2165_v44  ;;  %v2178_v23 = vmul.f32 %v2887_v31, %v2166_v56 }
0x1825   :  { %2306 = vxpose.xlu0.b32.start [1/2] (short) (narrow) %v2304_v29, 8 }
0x1826   :  { %2179 = vxpose.xlu1.b32.start [1/2] (short) (narrow) %v2177_v51, 8  ;;  %v2413_v42 = vadd.f32 %v2304_v29, %v2177_v51  ;;  %v2414_v18 = vadd.f32 %v2305_v49, %v2178_v23 }
0x1828   :  { %2415 = vst.msk [vmem:[%s3716_s9] sm:$0xff] %vm2143_vm7, %v2413_v42  ;;  %2416 = vst.msk [vmem:[%s3716_s9 + $0x8] sm:$0xff] %vm2143_vm7, %v2414_v18 }
0x1829   :  { %2307 = vxpose.xlu0.b32.end [2/2] (short) (narrow) %v2305_v49, 8 }
0x182a   :  { %2180 = vxpose.xlu1.b32.end [2/2] (short) (narrow) %v2178_v23, 8 }
0x18a1   :  { %v2322_v53 = vpop.trf.xlu0 }
0x18a2   :  { %v2195_v19 = vpop.trf.xlu1  ;;  %2719 = vmatmul.mubr.msk.f32.vlgmr.msra.gmra.mxu0 %vm65_vm0, %v2322_v53 }
0x18a3   :  { %2712 = vmatmul.mubr.msk.f32.vlgmr.msra.gmra.mxu1 %vm65_vm0, %v2195_v19 }
0x1962   :  { %v2407_v3 = vpop.f32.mrf.mxu0 }
0x1963   :  { %v2280_v24 = vpop.f32.mrf.mxu1  ;;  %2412 = vst.msk [vmem:[#allocation4 + $0x4] sm:$0xf] %vm2284_vm1, %v2407_v3 }
0x1964   :  { %2285 = vst.msk [vmem:[#allocation4] sm:$0xf] %vm2284_vm1, %v2280_v24  ;;  %v2720_v26 = vpop.f32.mrf.mxu0 }
0x1965   :  { %v2713_v27 = vpop.f32.mrf.mxu1 }
0x1966   :  { %2904 = shalt.err (!%p2901_p4)
}
0x1967   :  { %s2923_s9 = smov 4  }
0x1968   :  { %2428 = dma.vmem_to_hbm [thread:$0]  %s2423_s30, 128, %s3715_s8, [#allocation5], %s2919_s5, %s2919_s5, %s2923_s9  }
0x1969   :  { %2913 = dma.done.wait [#allocation5], 128  }
0x196a   :  { %2914 = vsyncadd [#allocation5], 4294967168 }
0x196b   :  { %2436 = vsyncpa [#allocation5], 1 }

</bundles_post_ra>
